<compile_context>
chip_gen: v5e
topology: v5e:2x2
jax: 0.10.0
libtpu: 0.0.40
codegen_flags: <defaults>
</compile_context>

<pallas_src>
import functools

import jax
import jax.numpy as jnp
from jax import lax
from jax.experimental import pallas as pl
from jax.experimental.pallas import tpu as pltpu

_NEG_INF = -1e30


# ------------------------------------------------------------------ helpers

def _pick_tile(dim, target, align):
    """Largest `align`-multiple tile <= target that divides dim, else the full dim."""
    if dim <= target:
        return dim
    t = (target // align) * align
    while t >= align:
        if dim % t == 0:
            return t
        t -= align
    return dim


def _erf(x):
    # Abramowitz & Stegun 7.1.26 rational approximation (max abs err ~1.5e-7).
    a1, a2, a3, a4, a5 = 0.254829592, -0.284496736, 1.421413741, -1.453152027, 1.061405429
    p = 0.3275911
    ax = jnp.abs(x)
    t = 1.0 / (1.0 + p * ax)
    poly = ((((a5 * t + a4) * t + a3) * t + a2) * t + a1) * t
    y = 1.0 - poly * jnp.exp(-ax * ax)
    return jnp.where(x >= 0.0, y, -y)


def _gelu_exact(x):
    # torch.nn.GELU default (erf form).
    return 0.5 * x * (1.0 + _erf(x * 0.7071067811865475))


# ------------------------------------------------------- RMSNorm row scales

def _rms_scale_kernel(x_ref, o_ref):
    x = x_ref[...].astype(jnp.float32)
    ms = jnp.mean(x * x, axis=-1, keepdims=True)
    o_ref[...] = lax.rsqrt(ms + 1e-6)


def rms_scale(x, *, tm_target=256):
    """x: [M, D] (bf16/f32) -> per-row rsqrt(mean(x^2)+eps) as [M, 1] f32."""
    M, D = x.shape
    tm = _pick_tile(M, tm_target, 8)
    return pl.pallas_call(
        _rms_scale_kernel,
        out_shape=jax.ShapeDtypeStruct((M, 1), jnp.float32),
        grid=(M // tm,),
        in_specs=[pl.BlockSpec((tm, D), lambda i: (i, 0))],
        out_specs=pl.BlockSpec((tm, 1), lambda i: (i, 0)),
        compiler_params=pltpu.CompilerParams(
            dimension_semantics=("parallel",)),
    )(x)


# ------------------------------------------------ fused tiled linear kernel

def _linear_kernel(*refs, has_norm, has_bias, has_res, activation):
    it = iter(refs)
    x_ref = next(it)
    scale_ref = next(it) if has_norm else None
    w_ref = next(it)
    b_ref = next(it) if has_bias else None
    r_ref = next(it) if has_res else None
    o_ref = next(it)
    acc_ref = next(it)

    k = pl.program_id(2)

    @pl.when(k == 0)
    def _init():
        acc_ref[...] = jnp.zeros_like(acc_ref)

    x = x_ref[...]
    if has_norm:
        # fused RMSNorm prologue (gain already folded into w): x * rsqrt(mean x^2)
        x = x.astype(jnp.float32) * scale_ref[...]
    # bf16 MXU feed, f32 accumulation.
    acc_ref[...] += jnp.dot(x.astype(w_ref.dtype), w_ref[...],
                            preferred_element_type=jnp.float32)

    @pl.when(k == pl.num_programs(2) - 1)
    def _finalize():
        acc = acc_ref[...]
        if has_bias:
            acc = acc + b_ref[...].astype(jnp.float32)
        if activation == "gelu":
            acc = _gelu_exact(acc)
        if has_res:
            acc = acc + r_ref[...].astype(jnp.float32)
        o_ref[...] = acc.astype(o_ref.dtype)


def linear(x, w, b=None, *, norm_scale=None, residual=None, activation=None,
           out_dtype=jnp.bfloat16, tm_target=256, tn_target=256, tk_target=512):
    """y = act((norm? x*scale : x) @ w + b) + residual, tiled over (M, N, K).

    x: [M, K] (bf16), w: [K, N] bf16 (norm gain pre-folded), b: [N] or None,
    norm_scale: [M, 1] f32 or None, residual: [M, N] or None.
    K is the innermost ("arbitrary") axis; f32 VMEM accumulator, bf16/f32 out.
    """
    M, K = x.shape
    K2, N = w.shape
    assert K == K2
    tm = _pick_tile(M, tm_target, 8)
    tn = _pick_tile(N, tn_target, 128)
    tk = _pick_tile(K, tk_target, 128)
    grid = (M // tm, N // tn, K // tk)

    in_specs = [pl.BlockSpec((tm, tk), lambda i, j, k: (i, k))]
    operands = [x]
    if norm_scale is not None:
        in_specs.append(pl.BlockSpec((tm, 1), lambda i, j, k: (i, 0)))
        operands.append(norm_scale)
    in_specs.append(pl.BlockSpec((tk, tn), lambda i, j, k: (k, j)))
    operands.append(w)
    if b is not None:
        in_specs.append(pl.BlockSpec((1, tn), lambda i, j, k: (0, j)))
        operands.append(b.reshape(1, N))
    if residual is not None:
        in_specs.append(pl.BlockSpec((tm, tn), lambda i, j, k: (i, j)))
        operands.append(residual)

    kernel = functools.partial(
        _linear_kernel,
        has_norm=norm_scale is not None,
        has_bias=b is not None,
        has_res=residual is not None,
        activation=activation)

    return pl.pallas_call(
        kernel,
        out_shape=jax.ShapeDtypeStruct((M, N), out_dtype),
        grid=grid,
        in_specs=in_specs,
        out_specs=pl.BlockSpec((tm, tn), lambda i, j, k: (i, j)),
        scratch_shapes=[pltpu.VMEM((tm, tn), jnp.float32)],
        compiler_params=pltpu.CompilerParams(
            dimension_semantics=("parallel", "parallel", "arbitrary")),
    )(*operands)


# ------------------------------------------------- flash causal attention

def _flash_attn_kernel(qi_tbl, ki_tbl, q_ref, k_ref, v_ref, o_ref,
                       m_sc, l_sc, acc_sc, q_sc, *, sm_scale, blk):
    s_idx = pl.program_id(1)
    qi = qi_tbl[s_idx]
    ki = ki_tbl[s_idx]

    @pl.when(ki == 0)
    def _init():
        m_sc[...] = jnp.full_like(m_sc, _NEG_INF)
        l_sc[...] = jnp.zeros_like(l_sc)
        acc_sc[...] = jnp.zeros_like(acc_sc)
        # Hoisted: q relayout to head-major, done once per query row.
        q_sc[...] = jnp.swapaxes(q_ref[...], 0, 1)          # (H, blk, Dh) bf16

    def _step(masked):
        k = jnp.swapaxes(k_ref[...], 0, 1)                  # (H, blk, Dh) bf16
        v = jnp.swapaxes(v_ref[...], 0, 1)
        s = jnp.einsum("hqd,hkd->hqk", q_sc[...], k,
                       preferred_element_type=jnp.float32) * sm_scale
        if masked:
            # Diagonal block only: within-block lower-triangular mask.
            row = lax.broadcasted_iota(jnp.int32, (1, blk, blk), 1)
            col = lax.broadcasted_iota(jnp.int32, (1, blk, blk), 2)
            s = jnp.where(col <= row, s, _NEG_INF)
        m_prev = m_sc[...]
        m_new = jnp.maximum(m_prev, jnp.max(s, axis=-1, keepdims=True))
        alpha = jnp.exp(m_prev - m_new)
        p = jnp.exp(s - m_new)
        l_sc[...] = alpha * l_sc[...] + jnp.sum(p, axis=-1, keepdims=True)
        pv = jnp.einsum("hqk,hkd->hqd", p.astype(v.dtype), v,
                        preferred_element_type=jnp.float32)
        acc_sc[...] = alpha * acc_sc[...] + pv
        m_sc[...] = m_new

    @pl.when(ki < qi)              # off-diagonal: no mask needed
    def _off_diag():
        _step(masked=False)

    @pl.when(ki == qi)             # diagonal: mask, then finalize + store
    def _diag():
        _step(masked=True)
        inv_l = pl.reciprocal(l_sc[...], approx=True)        # EUP, ~free slot
        out = acc_sc[...] * inv_l                            # (H, blk, Dh) f32
        out = jnp.swapaxes(out, 0, 1)                        # (blk, H, Dh)
        h, dh = out.shape[1], out.shape[2]
        o_ref[...] = out.reshape(blk, h * dh).astype(o_ref.dtype)  # lane-dense


def flash_attention(qkv, *, blk_target=256):
    """Causal MHA over a fused qkv buffer.

    qkv: [B, T, 3, H, Dh] bf16 (a free reshape of the [B*T, 3*D] projection).
    Returns [B, T, D] bf16 (lane-dense) so the o-projection only reshapes.
    Only lower-triangular (qi, ki) block pairs are visited: scalar-prefetched
    step->(qi, ki) tables drive the index maps, so upper-triangular blocks cost
    neither K/V DMA nor grid steps.
    """
    B, T, _three, H, Dh = qkv.shape
    D = H * Dh
    # blk_target=256 matches the 256-wide MXU on v6e/v7x; on v5e 128 suffices.
    blk = _pick_tile(T, blk_target, 8)
    nblk = T // blk

    qi_list, ki_list = [], []
    for qi in range(nblk):
        for ki in range(qi + 1):
            qi_list.append(qi)
            ki_list.append(ki)
    qi_tbl = jnp.asarray(qi_list, dtype=jnp.int32)
    ki_tbl = jnp.asarray(ki_list, dtype=jnp.int32)
    n_pairs = len(qi_list)

    qkv_blk = (None, blk, None, H, Dh)
    q_spec = pl.BlockSpec(qkv_blk, lambda b, s, qt, kt: (b, qt[s], 0, 0, 0))
    k_spec = pl.BlockSpec(qkv_blk, lambda b, s, qt, kt: (b, kt[s], 1, 0, 0))
    v_spec = pl.BlockSpec(qkv_blk, lambda b, s, qt, kt: (b, kt[s], 2, 0, 0))
    o_spec = pl.BlockSpec((None, blk, D), lambda b, s, qt, kt: (b, qt[s], 0))

    return pl.pallas_call(
        functools.partial(_flash_attn_kernel,
                          sm_scale=1.0 / (Dh ** 0.5), blk=blk),
        out_shape=jax.ShapeDtypeStruct((B, T, D), jnp.bfloat16),
        grid_spec=pltpu.PrefetchScalarGridSpec(
            num_scalar_prefetch=2,
            grid=(B, n_pairs),
            in_specs=[q_spec, k_spec, v_spec],
            out_specs=o_spec,
            scratch_shapes=[pltpu.VMEM((H, blk, 1), jnp.float32),    # running max
                            pltpu.VMEM((H, blk, 1), jnp.float32),    # running sum
                            pltpu.VMEM((H, blk, Dh), jnp.float32),   # output acc
                            pltpu.VMEM((H, blk, Dh), jnp.bfloat16)]  # cached q
        ),
        compiler_params=pltpu.CompilerParams(
            dimension_semantics=("parallel", "arbitrary")),
    )(qi_tbl, ki_tbl, qkv, qkv, qkv)


# ------------------------------------------------------------ model wrapper

def transformer_block(x2d, B, T, p, num_heads):
    M, D = x2d.shape
    H = num_heads
    Dh = D // H

    # --- attention sub-block (pre-norm; residual fused into o-projection) ---
    s1 = rms_scale(x2d)                                               # [M,1] f32
    qkv = linear(x2d, p["w_qkv"], norm_scale=s1)                      # [M,3D] bf16
    attn = flash_attention(qkv.reshape(B, T, 3, H, Dh))               # [B,T,D] bf16
    x2d = linear(attn.reshape(M, D), p["w_o"], residual=x2d)          # [M,D] bf16

    # --- feed-forward sub-block (norm + gelu + bias + residual fused) ---
    s2 = rms_scale(x2d)
    h = linear(x2d, p["w_ff1"], p["b_ff1"], norm_scale=s2, activation="gelu")
    x2d = linear(h, p["w_ff2"], p["b_ff2"], residual=x2d)
    return x2d


def llm_forward(tokens, params, *, num_heads, vocab_size):
    B, T = tokens.shape
    # token embedding lookup (gather) kept as plain-JAX glue; bf16 stream.
    x = params["tok_emb"][tokens]                                     # [B,T,D] bf16
    # TODO(synk): training-mode dropout (prng mask) not implemented (p=0.0, inference).
    D = x.shape[-1]
    x2d = x.reshape(B * T, D)
    for blk in params["blocks"]:
        x2d = transformer_block(x2d, B, T, blk, num_heads)
    s = rms_scale(x2d)
    # final norm fused into the (padded, lane-dense) vocab projection.
    logits = linear(x2d, params["w_head"], params["b_head"], norm_scale=s,
                    out_dtype=jnp.float32,
                    tm_target=512, tn_target=512, tk_target=512)      # [B*T, Vpad] f32
    logits = logits[:, :vocab_size]
    return logits.reshape(B, T, vocab_size)


# ---------------------------------------------------------------- init

def init_params(key, vocab_size, dim_emb, num_layers, ffd_hidden, ffd_bias):
    """Creates params with RMSNorm gains folded into consuming weights (bf16)
    and the vocab head padded to a multiple of 128 lanes."""
    wdt = jnp.bfloat16

    def nrm(k, shape, scale=0.02):
        return scale * jax.random.normal(k, shape, dtype=jnp.float32)

    keys = jax.random.split(key, 2 + num_layers)

    # Final norm gain folded into the head weight; pad vocab to 128-lane multiple.
    norm_g = jnp.ones((dim_emb,), jnp.float32)
    w_head = norm_g[:, None] * nrm(keys[1], (dim_emb, vocab_size))
    b_head = jnp.zeros((vocab_size,), jnp.float32)
    v_pad = (-vocab_size) % 128
    w_head = jnp.pad(w_head, ((0, 0), (0, v_pad))).astype(wdt)
    b_head = jnp.pad(b_head, (0, v_pad))

    params = {
        "tok_emb": nrm(keys[0], (vocab_size, dim_emb)).astype(jnp.bfloat16),
        "w_head": w_head,
        "b_head": b_head,
        "blocks": [],
    }
    for i in range(num_layers):
        ks = jax.random.split(keys[2 + i], 4)
        ln1_g = jnp.ones((dim_emb,), jnp.float32)
        ln2_g = jnp.ones((dim_emb,), jnp.float32)
        params["blocks"].append({
            # pre-norm gains folded into w_qkv / w_ff1 (gain[:,None] * W)
            "w_qkv": (ln1_g[:, None] * nrm(ks[0], (dim_emb, 3 * dim_emb))).astype(wdt),
            "w_o": nrm(ks[1], (dim_emb, dim_emb)).astype(wdt),
            "w_ff1": (ln2_g[:, None] * nrm(ks[2], (dim_emb, ffd_hidden))).astype(wdt),
            "b_ff1": (jnp.zeros((ffd_hidden,), jnp.float32) if ffd_bias else None),
            "w_ff2": nrm(ks[3], (ffd_hidden, dim_emb)).astype(wdt),
            "b_ff2": (jnp.zeros((dim_emb,), jnp.float32) if ffd_bias else None),
        })
    return params


# ---------------------------------------------------------------- main

if __name__ == "__main__":
    vocab_size = 64
    context_size = 8
    dim_emb = 32
    num_layers = 2
    attn_num_heads = 4
    ffd_hidden_dim = 64
    ffd_bias = False

    B, T = 2, context_size

    key = jax.random.PRNGKey(0)
    pkey, xkey = jax.random.split(key)
    params = init_params(pkey, vocab_size, dim_emb, num_layers,
                         ffd_hidden_dim, ffd_bias)
    tokens = jax.random.randint(xkey, (B, T), 0, vocab_size, dtype=jnp.int32)

    fwd = jax.jit(functools.partial(llm_forward, num_heads=attn_num_heads,
                                    vocab_size=vocab_size))
    logits = fwd(tokens, params)
    logits = jax.block_until_ready(logits)
    assert logits.shape == (B, T, vocab_size), logits.shape
    assert bool(jnp.all(jnp.isfinite(logits)))
    print("KERNEL_OK")
</pallas_src>

<mosaic_0001>
module attributes {stable_mosaic.version = 11 : i64} {
  func.func @_rms_scale_kernel(%arg0: i32, %arg1: memref<16x32xbf16, #tpu.memory_space<vmem>>, %arg2: memref<16x1xf32, #tpu.memory_space<vmem>>) attributes {dimension_semantics = [#tpu.dimension_semantics<parallel>], iteration_bounds = array<i64: 1>, scalar_prefetch = 0 : i64, scratch_operands = 0 : i64, tpu.core_type = #tpu.core_type<tc>, window_params = [{transform_indices = @transform_0, window_bounds = array<i64: 16, 32>}, {transform_indices = @transform_1, window_bounds = array<i64: 16, 1>}]} {
    %c0 = arith.constant 0 : index
    %c0_0 = arith.constant 0 : index
    %0 = vector.load %arg1[%c0, %c0_0] : memref<16x32xbf16, #tpu.memory_space<vmem>>, vector<16x32xbf16>
    %1 = arith.extf %0 : vector<16x32xbf16> to vector<16x32xf32>
    %2 = arith.mulf %1, %1 : vector<16x32xf32>
    %cst = arith.constant dense<0.000000e+00> : vector<16xf32>
    %3 = vector.multi_reduction <add>, %2, %cst [1] : vector<16x32xf32> to vector<16xf32>
    %4 = vector.shape_cast %3 : vector<16xf32> to vector<16x1xf32>
    %cst_1 = arith.constant 3.200000e+01 : f32
    %5 = vector.broadcast %cst_1 : f32 to vector<16x1xf32>
    %6 = arith.divf %4, %5 : vector<16x1xf32>
    %cst_2 = arith.constant 9.99999997E-7 : f32
    %7 = vector.broadcast %cst_2 : f32 to vector<16x1xf32>
    %8 = arith.addf %6, %7 : vector<16x1xf32>
    %9 = math.rsqrt %8 : vector<16x1xf32>
    %c0_3 = arith.constant 0 : index
    %c0_4 = arith.constant 0 : index
    %10 = vector.load %arg2[%c0_3, %c0_4] : memref<16x1xf32, #tpu.memory_space<vmem>>, vector<16x1xf32>
    tpu.vector_store %arg2[%c0_3, %c0_4], %9 {strides = array<i32>} : memref<16x1xf32, #tpu.memory_space<vmem>>, vector<16x1xf32>,
    return
  }
  func.func @transform_0(%arg0: i32) -> (i32, i32) {
    %c0_i32 = arith.constant 0 : i32
    %c0_i32_0 = arith.constant 0 : i32
    return %arg0, %c0_i32 : i32, i32
  }
  func.func @transform_1(%arg0: i32) -> (i32, i32) {
    %c0_i32 = arith.constant 0 : i32
    %c0_i32_0 = arith.constant 0 : i32
    return %arg0, %c0_i32 : i32, i32
  }
}

module attributes {stable_mosaic.version = 11 : i64} {
  func.func @_linear_kernel(%arg0: i32, %arg1: i32, %arg2: i32, %arg3: memref<16x32xbf16, #tpu.memory_space<vmem>>, %arg4: memref<16x1xf32, #tpu.memory_space<vmem>>, %arg5: memref<32x96xbf16, #tpu.memory_space<vmem>>, %arg6: memref<16x96xbf16, #tpu.memory_space<vmem>>, %arg7: memref<16x96xf32, #tpu.memory_space<vmem>>) attributes {dimension_semantics = [#tpu.dimension_semantics<parallel>, #tpu.dimension_semantics<parallel>, #tpu.dimension_semantics<arbitrary>], iteration_bounds = array<i64: 1, 1, 1>, scalar_prefetch = 0 : i64, scratch_operands = 1 : i64, tpu.core_type = #tpu.core_type<tc>, window_params = [{transform_indices = @transform_0, window_bounds = array<i64: 16, 32>}, {transform_indices = @transform_1, window_bounds = array<i64: 16, 1>}, {transform_indices = @transform_2, window_bounds = array<i64: 32, 96>}, {transform_indices = @transform_3, window_bounds = array<i64: 16, 96>}]} {
    %c0_i32 = arith.constant 0 : i32
    %0 = arith.cmpi eq, %arg2, %c0_i32 : i32
    %1 = arith.extui %0 : i1 to i32
    %c0_i32_0 = arith.constant 0 : i32
    %2 = arith.cmpi ne, %1, %c0_i32_0 : i32
    scf.if %2 {
      %cst_12 = arith.constant 0.000000e+00 : f32
      %17 = vector.broadcast %cst_12 : f32 to vector<16x96xf32>
      %c0_13 = arith.constant 0 : index
      %c0_14 = arith.constant 0 : index
      %18 = vector.load %arg7[%c0_13, %c0_14] : memref<16x96xf32, #tpu.memory_space<vmem>>, vector<16x96xf32>
      tpu.vector_store %arg7[%c0_13, %c0_14], %17 {strides = array<i32>} : memref<16x96xf32, #tpu.memory_space<vmem>>, vector<16x96xf32>,
    } else {
    }
    %c0 = arith.constant 0 : index
    %c0_1 = arith.constant 0 : index
    %3 = vector.load %arg3[%c0, %c0_1] : memref<16x32xbf16, #tpu.memory_space<vmem>>, vector<16x32xbf16>
    %4 = arith.extf %3 : vector<16x32xbf16> to vector<16x32xf32>
    %c0_2 = arith.constant 0 : index
    %c0_3 = arith.constant 0 : index
    %5 = vector.load %arg4[%c0_2, %c0_3] : memref<16x1xf32, #tpu.memory_space<vmem>>, vector<16x1xf32>
    %6 = vector.broadcast %5 : vector<16x1xf32> to vector<16x32xf32>
    %7 = arith.mulf %4, %6 : vector<16x32xf32>
    %c0_4 = arith.constant 0 : index
    %c0_5 = arith.constant 0 : index
    %8 = vector.load %arg7[%c0_4, %c0_5] : memref<16x96xf32, #tpu.memory_space<vmem>>, vector<16x96xf32>
    %9 = arith.truncf %7 : vector<16x32xf32> to vector<16x32xbf16>
    %c0_6 = arith.constant 0 : index
    %c0_7 = arith.constant 0 : index
    %10 = vector.load %arg5[%c0_6, %c0_7] : memref<32x96xbf16, #tpu.memory_space<vmem>>, vector<32x96xbf16>
    %cst = arith.constant dense<0.000000e+00> : vector<16x96xf32>
    %11 = tpu.matmul %9, %10, %cst {dimension_numbers = #tpu.dot_dimension_numbers<[1], [0], [0], [1], [0, 0, 1, 1], [], []>} : vector<16x32xbf16>, vector<32x96xbf16>, vector<16x96xf32> -> vector<16x96xf32>
    %12 = arith.addf %8, %11 : vector<16x96xf32>
    %c0_8 = arith.constant 0 : index
    %c0_9 = arith.constant 0 : index
    %13 = vector.load %arg7[%c0_8, %c0_9] : memref<16x96xf32, #tpu.memory_space<vmem>>, vector<16x96xf32>
    tpu.vector_store %arg7[%c0_8, %c0_9], %12 {strides = array<i32>} : memref<16x96xf32, #tpu.memory_space<vmem>>, vector<16x96xf32>,
    %c0_i32_10 = arith.constant 0 : i32
    %14 = arith.cmpi eq, %arg2, %c0_i32_10 : i32
    %15 = arith.extui %14 : i1 to i32
    %c0_i32_11 = arith.constant 0 : i32
    %16 = arith.cmpi ne, %15, %c0_i32_11 : i32
    scf.if %16 {
      %c0_12 = arith.constant 0 : index
      %c0_13 = arith.constant 0 : index
      %17 = vector.load %arg7[%c0_12, %c0_13] : memref<16x96xf32, #tpu.memory_space<vmem>>, vector<16x96xf32>
      %18 = arith.truncf %17 : vector<16x96xf32> to vector<16x96xbf16>
      %c0_14 = arith.constant 0 : index
      %c0_15 = arith.constant 0 : index
      %19 = vector.load %arg6[%c0_14, %c0_15] : memref<16x96xbf16, #tpu.memory_space<vmem>>, vector<16x96xbf16>
      tpu.vector_store %arg6[%c0_14, %c0_15], %18 {strides = array<i32>} : memref<16x96xbf16, #tpu.memory_space<vmem>>, vector<16x96xbf16>,
    } else {
    }
    return
  }
  func.func @transform_0(%arg0: i32, %arg1: i32, %arg2: i32) -> (i32, i32) {
    %c0_i32 = arith.constant 0 : i32
    return %arg0, %arg2 : i32, i32
  }
  func.func @transform_1(%arg0: i32, %arg1: i32, %arg2: i32) -> (i32, i32) {
    %c0_i32 = arith.constant 0 : i32
    %c0_i32_0 = arith.constant 0 : i32
    return %arg0, %c0_i32 : i32, i32
  }
  func.func @transform_2(%arg0: i32, %arg1: i32, %arg2: i32) -> (i32, i32) {
    %c0_i32 = arith.constant 0 : i32
    return %arg2, %arg1 : i32, i32
  }
  func.func @transform_3(%arg0: i32, %arg1: i32, %arg2: i32) -> (i32, i32) {
    %c0_i32 = arith.constant 0 : i32
    return %arg0, %arg1 : i32, i32
  }
}

module attributes {stable_mosaic.version = 11 : i64} {
  func.func @_flash_attn_kernel(%arg0: i32, %arg1: i32, %arg2: memref<1xi32, #tpu.memory_space<smem>>, %arg3: memref<1xi32, #tpu.memory_space<smem>>, %arg4: memref<1x8x1x4x8xbf16, #tpu.memory_space<vmem>>, %arg5: memref<1x8x1x4x8xbf16, #tpu.memory_space<vmem>>, %arg6: memref<1x8x1x4x8xbf16, #tpu.memory_space<vmem>>, %arg7: memref<1x8x32xbf16, #tpu.memory_space<vmem>>, %arg8: memref<4x8x1xf32, #tpu.memory_space<vmem>>, %arg9: memref<4x8x1xf32, #tpu.memory_space<vmem>>, %arg10: memref<4x8x8xf32, #tpu.memory_space<vmem>>, %arg11: memref<4x8x8xbf16, #tpu.memory_space<vmem>>) attributes {dimension_semantics = [#tpu.dimension_semantics<parallel>, #tpu.dimension_semantics<arbitrary>], iteration_bounds = array<i64: 2, 1>, scalar_prefetch = 2 : i64, scratch_operands = 4 : i64, tpu.core_type = #tpu.core_type<tc>, window_params = [{transform_indices = @transform_0, window_bounds = array<i64: 1, 8, 1, 4, 8>}, {transform_indices = @transform_1, window_bounds = array<i64: 1, 8, 1, 4, 8>}, {transform_indices = @transform_2, window_bounds = array<i64: 1, 8, 1, 4, 8>}, {transform_indices = @transform_3, window_bounds = array<i64: 1, 8, 32>}]} {
    %0 = arith.index_cast %arg1 : i32 to index
    %1 = memref.load %arg2[%0] : memref<1xi32, #tpu.memory_space<smem>>
    %2 = arith.index_cast %arg1 : i32 to index
    %3 = memref.load %arg3[%2] : memref<1xi32, #tpu.memory_space<smem>>
    %c0_i32 = arith.constant 0 : i32
    %4 = arith.cmpi eq, %3, %c0_i32 : i32
    %5 = arith.extui %4 : i1 to i32
    %c0_i32_0 = arith.constant 0 : i32
    %6 = arith.cmpi ne, %5, %c0_i32_0 : i32
    scf.if %6 {
      %cst = arith.constant -1.000000e+30 : f32
      %13 = vector.broadcast %cst : f32 to vector<4x8x1xf32>
      %c0 = arith.constant 0 : index
      %c0_3 = arith.constant 0 : index
      %c0_4 = arith.constant 0 : index
      %14 = vector.load %arg8[%c0, %c0_3, %c0_4] : memref<4x8x1xf32, #tpu.memory_space<vmem>>, vector<4x8x1xf32>
      tpu.vector_store %arg8[%c0, %c0_3, %c0_4], %13 {strides = array<i32>} : memref<4x8x1xf32, #tpu.memory_space<vmem>>, vector<4x8x1xf32>,
      %cst_5 = arith.constant 0.000000e+00 : f32
      %15 = vector.broadcast %cst_5 : f32 to vector<4x8x1xf32>
      %c0_6 = arith.constant 0 : index
      %c0_7 = arith.constant 0 : index
      %c0_8 = arith.constant 0 : index
      %16 = vector.load %arg9[%c0_6, %c0_7, %c0_8] : memref<4x8x1xf32, #tpu.memory_space<vmem>>, vector<4x8x1xf32>
      tpu.vector_store %arg9[%c0_6, %c0_7, %c0_8], %15 {strides = array<i32>} : memref<4x8x1xf32, #tpu.memory_space<vmem>>, vector<4x8x1xf32>,
      %cst_9 = arith.constant 0.000000e+00 : f32
      %17 = vector.broadcast %cst_9 : f32 to vector<4x8x8xf32>
      %c0_10 = arith.constant 0 : index
      %c0_11 = arith.constant 0 : index
      %c0_12 = arith.constant 0 : index
      %18 = vector.load %arg10[%c0_10, %c0_11, %c0_12] : memref<4x8x8xf32, #tpu.memory_space<vmem>>, vector<4x8x8xf32>
      tpu.vector_store %arg10[%c0_10, %c0_11, %c0_12], %17 {strides = array<i32>} : memref<4x8x8xf32, #tpu.memory_space<vmem>>, vector<4x8x8xf32>,
      %c0_13 = arith.constant 0 : index
      %c0_14 = arith.constant 0 : index
      %c0_15 = arith.constant 0 : index
      %c0_16 = arith.constant 0 : index
      %c0_17 = arith.constant 0 : index
      %19 = vector.load %arg4[%c0_13, %c0_14, %c0_15, %c0_16, %c0_17] : memref<1x8x1x4x8xbf16, #tpu.memory_space<vmem>>, vector<1x8x1x4x8xbf16>
      %20 = vector.shape_cast %19 : vector<1x8x1x4x8xbf16> to vector<8x4x8xbf16>
      %21 = tpu.transpose %20, [1, 0, 2] : vector<8x4x8xbf16> -> vector<4x8x8xbf16>
      %c0_18 = arith.constant 0 : index
      %c0_19 = arith.constant 0 : index
      %c0_20 = arith.constant 0 : index
      %22 = vector.load %arg11[%c0_18, %c0_19, %c0_20] : memref<4x8x8xbf16, #tpu.memory_space<vmem>>, vector<4x8x8xbf16>
      tpu.vector_store %arg11[%c0_18, %c0_19, %c0_20], %21 {strides = array<i32>} : memref<4x8x8xbf16, #tpu.memory_space<vmem>>, vector<4x8x8xbf16>,
    } else {
    }
    %7 = arith.cmpi slt, %3, %1 : i32
    %8 = arith.extui %7 : i1 to i32
    %c0_i32_1 = arith.constant 0 : i32
    %9 = arith.cmpi ne, %8, %c0_i32_1 : i32
    scf.if %9 {
      %c0 = arith.constant 0 : index
      %c0_3 = arith.constant 0 : index
      %c0_4 = arith.constant 0 : index
      %c0_5 = arith.constant 0 : index
      %c0_6 = arith.constant 0 : index
      %13 = vector.load %arg5[%c0, %c0_3, %c0_4, %c0_5, %c0_6] : memref<1x8x1x4x8xbf16, #tpu.memory_space<vmem>>, vector<1x8x1x4x8xbf16>
      %14 = vector.shape_cast %13 : vector<1x8x1x4x8xbf16> to vector<8x4x8xbf16>
      %15 = tpu.transpose %14, [1, 0, 2] : vector<8x4x8xbf16> -> vector<4x8x8xbf16>
      %c0_7 = arith.constant 0 : index
      %c0_8 = arith.constant 0 : index
      %c0_9 = arith.constant 0 : index
      %c0_10 = arith.constant 0 : index
      %c0_11 = arith.constant 0 : index
      %16 = vector.load %arg6[%c0_7, %c0_8, %c0_9, %c0_10, %c0_11] : memref<1x8x1x4x8xbf16, #tpu.memory_space<vmem>>, vector<1x8x1x4x8xbf16>
      %17 = vector.shape_cast %16 : vector<1x8x1x4x8xbf16> to vector<8x4x8xbf16>
      %18 = tpu.transpose %17, [1, 0, 2] : vector<8x4x8xbf16> -> vector<4x8x8xbf16>
      %c0_12 = arith.constant 0 : index
      %c0_13 = arith.constant 0 : index
      %c0_14 = arith.constant 0 : index
      %19 = vector.load %arg11[%c0_12, %c0_13, %c0_14] : memref<4x8x8xbf16, #tpu.memory_space<vmem>>, vector<4x8x8xbf16>
      "tpu.trace_start"() <{level = 10 : i32, message = "hqd,hkd->hqk"}> : () -> ()
      %cst = arith.constant dense<0.000000e+00> : vector<4x8x8xf32>
      %20 = tpu.matmul %19, %15, %cst {dimension_numbers = #tpu.dot_dimension_numbers<[2], [2], [1], [1], [0, 0, 0, 1, 1, 1], [0], [0]>} : vector<4x8x8xbf16>, vector<4x8x8xbf16>, vector<4x8x8xf32> -> vector<4x8x8xf32>
      "tpu.trace_stop"() : () -> ()
      %cst_15 = arith.constant 0.353553385 : f32
      %21 = vector.broadcast %cst_15 : f32 to vector<4x8x8xf32>
      %22 = arith.mulf %20, %21 : vector<4x8x8xf32>
      %c0_16 = arith.constant 0 : index
      %c0_17 = arith.constant 0 : index
      %c0_18 = arith.constant 0 : index
      %23 = vector.load %arg8[%c0_16, %c0_17, %c0_18] : memref<4x8x1xf32, #tpu.memory_space<vmem>>, vector<4x8x1xf32>
      %cst_19 = arith.constant dense<0xFF800000> : vector<4x8xf32>
      %24 = vector.multi_reduction <maximumf>, %22, %cst_19 [2] : vector<4x8x8xf32> to vector<4x8xf32>
      %25 = vector.shape_cast %24 : vector<4x8xf32> to vector<4x8x1xf32>
      %26 = arith.maximumf %23, %25 : vector<4x8x1xf32>
      %27 = arith.subf %23, %26 : vector<4x8x1xf32>
      %28 = math.exp %27 : vector<4x8x1xf32>
      %29 = vector.broadcast %26 : vector<4x8x1xf32> to vector<4x8x8xf32>
      %30 = arith.subf %22, %29 : vector<4x8x8xf32>
      %31 = math.exp %30 : vector<4x8x8xf32>
      %c0_20 = arith.constant 0 : index
      %c0_21 = arith.constant 0 : index
      %c0_22 = arith.constant 0 : index
      %32 = vector.load %arg9[%c0_20, %c0_21, %c0_22] : memref<4x8x1xf32, #tpu.memory_space<vmem>>, vector<4x8x1xf32>
      %33 = arith.mulf %28, %32 : vector<4x8x1xf32>
      %cst_23 = arith.constant dense<0.000000e+00> : vector<4x8xf32>
      %34 = vector.multi_reduction <add>, %31, %cst_23 [2] : vector<4x8x8xf32> to vector<4x8xf32>
      %35 = vector.shape_cast %34 : vector<4x8xf32> to vector<4x8x1xf32>
      %36 = arith.addf %33, %35 : vector<4x8x1xf32>
      %c0_24 = arith.constant 0 : index
      %c0_25 = arith.constant 0 : index
      %c0_26 = arith.constant 0 : index
      %37 = vector.load %arg9[%c0_24, %c0_25, %c0_26] : memref<4x8x1xf32, #tpu.memory_space<vmem>>, vector<4x8x1xf32>
      tpu.vector_store %arg9[%c0_24, %c0_25, %c0_26], %36 {strides = array<i32>} : memref<4x8x1xf32, #tpu.memory_space<vmem>>, vector<4x8x1xf32>,
      %38 = arith.truncf %31 : vector<4x8x8xf32> to vector<4x8x8xbf16>
      "tpu.trace_start"() <{level = 10 : i32, message = "hqk,hkd->hqd"}> : () -> ()
      %cst_27 = arith.constant dense<0.000000e+00> : vector<4x8x8xf32>
      %39 = tpu.matmul %38, %18, %cst_27 {dimension_numbers = #tpu.dot_dimension_numbers<[2], [1], [1], [2], [0, 0, 0, 1, 1, 2], [0], [0]>} : vector<4x8x8xbf16>, vector<4x8x8xbf16>, vector<4x8x8xf32> -> vector<4x8x8xf32>
      "tpu.trace_stop"() : () -> ()
      %c0_28 = arith.constant 0 : index
      %c0_29 = arith.constant 0 : index
      %c0_30 = arith.constant 0 : index
      %40 = vector.load %arg10[%c0_28, %c0_29, %c0_30] : memref<4x8x8xf32, #tpu.memory_space<vmem>>, vector<4x8x8xf32>
      %41 = vector.broadcast %28 : vector<4x8x1xf32> to vector<4x8x8xf32>
      %42 = arith.mulf %41, %40 : vector<4x8x8xf32>
      %43 = arith.addf %42, %39 : vector<4x8x8xf32>
      %c0_31 = arith.constant 0 : index
      %c0_32 = arith.constant 0 : index
      %c0_33 = arith.constant 0 : index
      %44 = vector.load %arg10[%c0_31, %c0_32, %c0_33] : memref<4x8x8xf32, #tpu.memory_space<vmem>>, vector<4x8x8xf32>
      tpu.vector_store %arg10[%c0_31, %c0_32, %c0_33], %43 {strides = array<i32>} : memref<4x8x8xf32, #tpu.memory_space<vmem>>, vector<4x8x8xf32>,
      %c0_34 = arith.constant 0 : index
      %c0_35 = arith.constant 0 : index
      %c0_36 = arith.constant 0 : index
      %45 = vector.load %arg8[%c0_34, %c0_35, %c0_36] : memref<4x8x1xf32, #tpu.memory_space<vmem>>, vector<4x8x1xf32>
      tpu.vector_store %arg8[%c0_34, %c0_35, %c0_36], %26 {strides = array<i32>} : memref<4x8x1xf32, #tpu.memory_space<vmem>>, vector<4x8x1xf32>,
    } else {
    }
    %10 = arith.cmpi eq, %3, %1 : i32
    %11 = arith.extui %10 : i1 to i32
    %c0_i32_2 = arith.constant 0 : i32
    %12 = arith.cmpi ne, %11, %c0_i32_2 : i32
    scf.if %12 {
      %c0 = arith.constant 0 : index
      %c0_3 = arith.constant 0 : index
      %c0_4 = arith.constant 0 : index
      %c0_5 = arith.constant 0 : index
      %c0_6 = arith.constant 0 : index
      %13 = vector.load %arg5[%c0, %c0_3, %c0_4, %c0_5, %c0_6] : memref<1x8x1x4x8xbf16, #tpu.memory_space<vmem>>, vector<1x8x1x4x8xbf16>
      %14 = vector.shape_cast %13 : vector<1x8x1x4x8xbf16> to vector<8x4x8xbf16>
      %15 = tpu.transpose %14, [1, 0, 2] : vector<8x4x8xbf16> -> vector<4x8x8xbf16>
      %c0_7 = arith.constant 0 : index
      %c0_8 = arith.constant 0 : index
      %c0_9 = arith.constant 0 : index
      %c0_10 = arith.constant 0 : index
      %c0_11 = arith.constant 0 : index
      %16 = vector.load %arg6[%c0_7, %c0_8, %c0_9, %c0_10, %c0_11] : memref<1x8x1x4x8xbf16, #tpu.memory_space<vmem>>, vector<1x8x1x4x8xbf16>
      %17 = vector.shape_cast %16 : vector<1x8x1x4x8xbf16> to vector<8x4x8xbf16>
      %18 = tpu.transpose %17, [1, 0, 2] : vector<8x4x8xbf16> -> vector<4x8x8xbf16>
      %c0_12 = arith.constant 0 : index
      %c0_13 = arith.constant 0 : index
      %c0_14 = arith.constant 0 : index
      %19 = vector.load %arg11[%c0_12, %c0_13, %c0_14] : memref<4x8x8xbf16, #tpu.memory_space<vmem>>, vector<4x8x8xbf16>
      "tpu.trace_start"() <{level = 10 : i32, message = "hqd,hkd->hqk"}> : () -> ()
      %cst = arith.constant dense<0.000000e+00> : vector<4x8x8xf32>
      %20 = tpu.matmul %19, %15, %cst {dimension_numbers = #tpu.dot_dimension_numbers<[2], [2], [1], [1], [0, 0, 0, 1, 1, 1], [0], [0]>} : vector<4x8x8xbf16>, vector<4x8x8xbf16>, vector<4x8x8xf32> -> vector<4x8x8xf32>
      "tpu.trace_stop"() : () -> ()
      %cst_15 = arith.constant 0.353553385 : f32
      %21 = vector.broadcast %cst_15 : f32 to vector<4x8x8xf32>
      %22 = arith.mulf %20, %21 : vector<4x8x8xf32>
      %23 = tpu.iota {dimensions = array<i32: 1>} : vector<1x8x8xi32>
      %24 = tpu.iota {dimensions = array<i32: 2>} : vector<1x8x8xi32>
      %25 = arith.cmpi sle, %24, %23 : vector<1x8x8xi32>
      %cst_16 = arith.constant -1.000000e+30 : f32
      %26 = vector.shape_cast %25 : vector<1x8x8xi1> to vector<1x8x8xi1>
      %27 = vector.broadcast %26 : vector<1x8x8xi1> to vector<4x8x8xi1>
      %28 = vector.broadcast %cst_16 : f32 to vector<4x8x8xf32>
      %29 = arith.select %27, %22, %28 : vector<4x8x8xi1>, vector<4x8x8xf32>
      %c0_17 = arith.constant 0 : index
      %c0_18 = arith.constant 0 : index
      %c0_19 = arith.constant 0 : index
      %30 = vector.load %arg8[%c0_17, %c0_18, %c0_19] : memref<4x8x1xf32, #tpu.memory_space<vmem>>, vector<4x8x1xf32>
      %cst_20 = arith.constant dense<0xFF800000> : vector<4x8xf32>
      %31 = vector.multi_reduction <maximumf>, %29, %cst_20 [2] : vector<4x8x8xf32> to vector<4x8xf32>
      %32 = vector.shape_cast %31 : vector<4x8xf32> to vector<4x8x1xf32>
      %33 = arith.maximumf %30, %32 : vector<4x8x1xf32>
      %34 = arith.subf %30, %33 : vector<4x8x1xf32>
      %35 = math.exp %34 : vector<4x8x1xf32>
      %36 = vector.broadcast %33 : vector<4x8x1xf32> to vector<4x8x8xf32>
      %37 = arith.subf %29, %36 : vector<4x8x8xf32>
      %38 = math.exp %37 : vector<4x8x8xf32>
      %c0_21 = arith.constant 0 : index
      %c0_22 = arith.constant 0 : index
      %c0_23 = arith.constant 0 : index
      %39 = vector.load %arg9[%c0_21, %c0_22, %c0_23] : memref<4x8x1xf32, #tpu.memory_space<vmem>>, vector<4x8x1xf32>
      %40 = arith.mulf %35, %39 : vector<4x8x1xf32>
      %cst_24 = arith.constant dense<0.000000e+00> : vector<4x8xf32>
      %41 = vector.multi_reduction <add>, %38, %cst_24 [2] : vector<4x8x8xf32> to vector<4x8xf32>
      %42 = vector.shape_cast %41 : vector<4x8xf32> to vector<4x8x1xf32>
      %43 = arith.addf %40, %42 : vector<4x8x1xf32>
      %c0_25 = arith.constant 0 : index
      %c0_26 = arith.constant 0 : index
      %c0_27 = arith.constant 0 : index
      %44 = vector.load %arg9[%c0_25, %c0_26, %c0_27] : memref<4x8x1xf32, #tpu.memory_space<vmem>>, vector<4x8x1xf32>
      tpu.vector_store %arg9[%c0_25, %c0_26, %c0_27], %43 {strides = array<i32>} : memref<4x8x1xf32, #tpu.memory_space<vmem>>, vector<4x8x1xf32>,
      %45 = arith.truncf %38 : vector<4x8x8xf32> to vector<4x8x8xbf16>
      "tpu.trace_start"() <{level = 10 : i32, message = "hqk,hkd->hqd"}> : () -> ()
      %cst_28 = arith.constant dense<0.000000e+00> : vector<4x8x8xf32>
      %46 = tpu.matmul %45, %18, %cst_28 {dimension_numbers = #tpu.dot_dimension_numbers<[2], [1], [1], [2], [0, 0, 0, 1, 1, 2], [0], [0]>} : vector<4x8x8xbf16>, vector<4x8x8xbf16>, vector<4x8x8xf32> -> vector<4x8x8xf32>
      "tpu.trace_stop"() : () -> ()
      %c0_29 = arith.constant 0 : index
      %c0_30 = arith.constant 0 : index
      %c0_31 = arith.constant 0 : index
      %47 = vector.load %arg10[%c0_29, %c0_30, %c0_31] : memref<4x8x8xf32, #tpu.memory_space<vmem>>, vector<4x8x8xf32>
      %48 = vector.broadcast %35 : vector<4x8x1xf32> to vector<4x8x8xf32>
      %49 = arith.mulf %48, %47 : vector<4x8x8xf32>
      %50 = arith.addf %49, %46 : vector<4x8x8xf32>
      %c0_32 = arith.constant 0 : index
      %c0_33 = arith.constant 0 : index
      %c0_34 = arith.constant 0 : index
      %51 = vector.load %arg10[%c0_32, %c0_33, %c0_34] : memref<4x8x8xf32, #tpu.memory_space<vmem>>, vector<4x8x8xf32>
      tpu.vector_store %arg10[%c0_32, %c0_33, %c0_34], %50 {strides = array<i32>} : memref<4x8x8xf32, #tpu.memory_space<vmem>>, vector<4x8x8xf32>,
      %c0_35 = arith.constant 0 : index
      %c0_36 = arith.constant 0 : index
      %c0_37 = arith.constant 0 : index
      %52 = vector.load %arg8[%c0_35, %c0_36, %c0_37] : memref<4x8x1xf32, #tpu.memory_space<vmem>>, vector<4x8x1xf32>
      tpu.vector_store %arg8[%c0_35, %c0_36, %c0_37], %33 {strides = array<i32>} : memref<4x8x1xf32, #tpu.memory_space<vmem>>, vector<4x8x1xf32>,
      %c0_38 = arith.constant 0 : index
      %c0_39 = arith.constant 0 : index
      %c0_40 = arith.constant 0 : index
      %53 = vector.load %arg9[%c0_38, %c0_39, %c0_40] : memref<4x8x1xf32, #tpu.memory_space<vmem>>, vector<4x8x1xf32>
      %54 = tpu.reciprocal %53 {approx = true} : vector<4x8x1xf32> -> vector<4x8x1xf32>
      %c0_41 = arith.constant 0 : index
      %c0_42 = arith.constant 0 : index
      %c0_43 = arith.constant 0 : index
      %55 = vector.load %arg10[%c0_41, %c0_42, %c0_43] : memref<4x8x8xf32, #tpu.memory_space<vmem>>, vector<4x8x8xf32>
      %56 = vector.broadcast %54 : vector<4x8x1xf32> to vector<4x8x8xf32>
      %57 = arith.mulf %55, %56 : vector<4x8x8xf32>
      %58 = tpu.transpose %57, [1, 0, 2] : vector<4x8x8xf32> -> vector<8x4x8xf32>
      %59 = vector.shape_cast %58 : vector<8x4x8xf32> to vector<8x32xf32>
      %60 = arith.truncf %59 : vector<8x32xf32> to vector<8x32xbf16>
      %c0_44 = arith.constant 0 : index
      %c0_45 = arith.constant 0 : index
      %c0_46 = arith.constant 0 : index
      %61 = vector.load %arg7[%c0_44, %c0_45, %c0_46] : memref<1x8x32xbf16, #tpu.memory_space<vmem>>, vector<1x8x32xbf16>
      %62 = vector.shape_cast %61 : vector<1x8x32xbf16> to vector<8x32xbf16>
      %63 = vector.shape_cast %60 : vector<8x32xbf16> to vector<1x8x32xbf16>
      tpu.vector_store %arg7[%c0_44, %c0_45, %c0_46], %63 {strides = array<i32>} : memref<1x8x32xbf16, #tpu.memory_space<vmem>>, vector<1x8x32xbf16>,
    } else {
    }
    return
  }
  func.func @transform_0(%arg0: i32, %arg1: i32, %arg2: memref<1xi32, #tpu.memory_space<smem>>, %arg3: memref<1xi32, #tpu.memory_space<smem>>) -> (i32, i32, i32, i32, i32) {
    %0 = arith.index_cast %arg1 : i32 to index
    %1 = memref.load %arg2[%0] : memref<1xi32, #tpu.memory_space<smem>>
    %c0_i32 = arith.constant 0 : i32
    %c0_i32_0 = arith.constant 0 : i32
    %c0_i32_1 = arith.constant 0 : i32
    %c0_i32_2 = arith.constant 0 : i32
    return %arg0, %1, %c0_i32, %c0_i32_0, %c0_i32_1 : i32, i32, i32, i32, i32
  }
  func.func @transform_1(%arg0: i32, %arg1: i32, %arg2: memref<1xi32, #tpu.memory_space<smem>>, %arg3: memref<1xi32, #tpu.memory_space<smem>>) -> (i32, i32, i32, i32, i32) {
    %0 = arith.index_cast %arg1 : i32 to index
    %1 = memref.load %arg3[%0] : memref<1xi32, #tpu.memory_space<smem>>
    %c1_i32 = arith.constant 1 : i32
    %c0_i32 = arith.constant 0 : i32
    %c0_i32_0 = arith.constant 0 : i32
    %c0_i32_1 = arith.constant 0 : i32
    return %arg0, %1, %c1_i32, %c0_i32, %c0_i32_0 : i32, i32, i32, i32, i32
  }
  func.func @transform_2(%arg0: i32, %arg1: i32, %arg2: memref<1xi32, #tpu.memory_space<smem>>, %arg3: memref<1xi32, #tpu.memory_space<smem>>) -> (i32, i32, i32, i32, i32) {
    %0 = arith.index_cast %arg1 : i32 to index
    %1 = memref.load %arg3[%0] : memref<1xi32, #tpu.memory_space<smem>>
    %c2_i32 = arith.constant 2 : i32
    %c0_i32 = arith.constant 0 : i32
    %c0_i32_0 = arith.constant 0 : i32
    %c0_i32_1 = arith.constant 0 : i32
    return %arg0, %1, %c2_i32, %c0_i32, %c0_i32_0 : i32, i32, i32, i32, i32
  }
  func.func @transform_3(%arg0: i32, %arg1: i32, %arg2: memref<1xi32, #tpu.memory_space<smem>>, %arg3: memref<1xi32, #tpu.memory_space<smem>>) -> (i32, i32, i32) {
    %0 = arith.index_cast %arg1 : i32 to index
    %1 = memref.load %arg2[%0] : memref<1xi32, #tpu.memory_space<smem>>
    %c0_i32 = arith.constant 0 : i32
    %c0_i32_0 = arith.constant 0 : i32
    return %arg0, %1, %c0_i32 : i32, i32, i32
  }
}

module attributes {stable_mosaic.version = 11 : i64} {
  func.func @_linear_kernel(%arg0: i32, %arg1: i32, %arg2: i32, %arg3: memref<16x32xbf16, #tpu.memory_space<vmem>>, %arg4: memref<32x32xbf16, #tpu.memory_space<vmem>>, %arg5: memref<16x32xbf16, #tpu.memory_space<vmem>>, %arg6: memref<16x32xbf16, #tpu.memory_space<vmem>>, %arg7: memref<16x32xf32, #tpu.memory_space<vmem>>) attributes {dimension_semantics = [#tpu.dimension_semantics<parallel>, #tpu.dimension_semantics<parallel>, #tpu.dimension_semantics<arbitrary>], iteration_bounds = array<i64: 1, 1, 1>, scalar_prefetch = 0 : i64, scratch_operands = 1 : i64, tpu.core_type = #tpu.core_type<tc>, window_params = [{transform_indices = @transform_0, window_bounds = array<i64: 16, 32>}, {transform_indices = @transform_1, window_bounds = array<i64: 32, 32>}, {transform_indices = @transform_2, window_bounds = array<i64: 16, 32>}, {transform_indices = @transform_3, window_bounds = array<i64: 16, 32>}]} {
    %c0_i32 = arith.constant 0 : i32
    %0 = arith.cmpi eq, %arg2, %c0_i32 : i32
    %1 = arith.extui %0 : i1 to i32
    %c0_i32_0 = arith.constant 0 : i32
    %2 = arith.cmpi ne, %1, %c0_i32_0 : i32
    scf.if %2 {
      %cst_10 = arith.constant 0.000000e+00 : f32
      %12 = vector.broadcast %cst_10 : f32 to vector<16x32xf32>
      %c0_11 = arith.constant 0 : index
      %c0_12 = arith.constant 0 : index
      %13 = vector.load %arg7[%c0_11, %c0_12] : memref<16x32xf32, #tpu.memory_space<vmem>>, vector<16x32xf32>
      tpu.vector_store %arg7[%c0_11, %c0_12], %12 {strides = array<i32>} : memref<16x32xf32, #tpu.memory_space<vmem>>, vector<16x32xf32>,
    } else {
    }
    %c0 = arith.constant 0 : index
    %c0_1 = arith.constant 0 : index
    %3 = vector.load %arg3[%c0, %c0_1] : memref<16x32xbf16, #tpu.memory_space<vmem>>, vector<16x32xbf16>
    %c0_2 = arith.constant 0 : index
    %c0_3 = arith.constant 0 : index
    %4 = vector.load %arg7[%c0_2, %c0_3] : memref<16x32xf32, #tpu.memory_space<vmem>>, vector<16x32xf32>
    %c0_4 = arith.constant 0 : index
    %c0_5 = arith.constant 0 : index
    %5 = vector.load %arg4[%c0_4, %c0_5] : memref<32x32xbf16, #tpu.memory_space<vmem>>, vector<32x32xbf16>
    %cst = arith.constant dense<0.000000e+00> : vector<16x32xf32>
    %6 = tpu.matmul %3, %5, %cst {dimension_numbers = #tpu.dot_dimension_numbers<[1], [0], [0], [1], [0, 0, 1, 1], [], []>} : vector<16x32xbf16>, vector<32x32xbf16>, vector<16x32xf32> -> vector<16x32xf32>
    %7 = arith.addf %4, %6 : vector<16x32xf32>
    %c0_6 = arith.constant 0 : index
    %c0_7 = arith.constant 0 : index
    %8 = vector.load %arg7[%c0_6, %c0_7] : memref<16x32xf32, #tpu.memory_space<vmem>>, vector<16x32xf32>
    tpu.vector_store %arg7[%c0_6, %c0_7], %7 {strides = array<i32>} : memref<16x32xf32, #tpu.memory_space<vmem>>, vector<16x32xf32>,
    %c0_i32_8 = arith.constant 0 : i32
    %9 = arith.cmpi eq, %arg2, %c0_i32_8 : i32
    %10 = arith.extui %9 : i1 to i32
    %c0_i32_9 = arith.constant 0 : i32
    %11 = arith.cmpi ne, %10, %c0_i32_9 : i32
    scf.if %11 {
      %c0_10 = arith.constant 0 : index
      %c0_11 = arith.constant 0 : index
      %12 = vector.load %arg7[%c0_10, %c0_11] : memref<16x32xf32, #tpu.memory_space<vmem>>, vector<16x32xf32>
      %c0_12 = arith.constant 0 : index
      %c0_13 = arith.constant 0 : index
      %13 = vector.load %arg5[%c0_12, %c0_13] : memref<16x32xbf16, #tpu.memory_space<vmem>>, vector<16x32xbf16>
      %14 = arith.extf %13 : vector<16x32xbf16> to vector<16x32xf32>
      %15 = arith.addf %12, %14 : vector<16x32xf32>
      %16 = arith.truncf %15 : vector<16x32xf32> to vector<16x32xbf16>
      %c0_14 = arith.constant 0 : index
      %c0_15 = arith.constant 0 : index
      %17 = vector.load %arg6[%c0_14, %c0_15] : memref<16x32xbf16, #tpu.memory_space<vmem>>, vector<16x32xbf16>
      tpu.vector_store %arg6[%c0_14, %c0_15], %16 {strides = array<i32>} : memref<16x32xbf16, #tpu.memory_space<vmem>>, vector<16x32xbf16>,
    } else {
    }
    return
  }
  func.func @transform_0(%arg0: i32, %arg1: i32, %arg2: i32) -> (i32, i32) {
    %c0_i32 = arith.constant 0 : i32
    return %arg0, %arg2 : i32, i32
  }
  func.func @transform_1(%arg0: i32, %arg1: i32, %arg2: i32) -> (i32, i32) {
    %c0_i32 = arith.constant 0 : i32
    return %arg2, %arg1 : i32, i32
  }
  func.func @transform_2(%arg0: i32, %arg1: i32, %arg2: i32) -> (i32, i32) {
    %c0_i32 = arith.constant 0 : i32
    return %arg0, %arg1 : i32, i32
  }
  func.func @transform_3(%arg0: i32, %arg1: i32, %arg2: i32) -> (i32, i32) {
    %c0_i32 = arith.constant 0 : i32
    return %arg0, %arg1 : i32, i32
  }
}

module attributes {stable_mosaic.version = 11 : i64} {
  func.func @_linear_kernel(%arg0: i32, %arg1: i32, %arg2: i32, %arg3: memref<16x64xbf16, #tpu.memory_space<vmem>>, %arg4: memref<64x32xbf16, #tpu.memory_space<vmem>>, %arg5: memref<16x32xbf16, #tpu.memory_space<vmem>>, %arg6: memref<16x32xbf16, #tpu.memory_space<vmem>>, %arg7: memref<16x32xf32, #tpu.memory_space<vmem>>) attributes {dimension_semantics = [#tpu.dimension_semantics<parallel>, #tpu.dimension_semantics<parallel>, #tpu.dimension_semantics<arbitrary>], iteration_bounds = array<i64: 1, 1, 1>, scalar_prefetch = 0 : i64, scratch_operands = 1 : i64, tpu.core_type = #tpu.core_type<tc>, window_params = [{transform_indices = @transform_0, window_bounds = array<i64: 16, 64>}, {transform_indices = @transform_1, window_bounds = array<i64: 64, 32>}, {transform_indices = @transform_2, window_bounds = array<i64: 16, 32>}, {transform_indices = @transform_3, window_bounds = array<i64: 16, 32>}]} {
    %c0_i32 = arith.constant 0 : i32
    %0 = arith.cmpi eq, %arg2, %c0_i32 : i32
    %1 = arith.extui %0 : i1 to i32
    %c0_i32_0 = arith.constant 0 : i32
    %2 = arith.cmpi ne, %1, %c0_i32_0 : i32
    scf.if %2 {
      %cst_10 = arith.constant 0.000000e+00 : f32
      %12 = vector.broadcast %cst_10 : f32 to vector<16x32xf32>
      %c0_11 = arith.constant 0 : index
      %c0_12 = arith.constant 0 : index
      %13 = vector.load %arg7[%c0_11, %c0_12] : memref<16x32xf32, #tpu.memory_space<vmem>>, vector<16x32xf32>
      tpu.vector_store %arg7[%c0_11, %c0_12], %12 {strides = array<i32>} : memref<16x32xf32, #tpu.memory_space<vmem>>, vector<16x32xf32>,
    } else {
    }
    %c0 = arith.constant 0 : index
    %c0_1 = arith.constant 0 : index
    %3 = vector.load %arg3[%c0, %c0_1] : memref<16x64xbf16, #tpu.memory_space<vmem>>, vector<16x64xbf16>
    %c0_2 = arith.constant 0 : index
    %c0_3 = arith.constant 0 : index
    %4 = vector.load %arg7[%c0_2, %c0_3] : memref<16x32xf32, #tpu.memory_space<vmem>>, vector<16x32xf32>
    %c0_4 = arith.constant 0 : index
    %c0_5 = arith.constant 0 : index
    %5 = vector.load %arg4[%c0_4, %c0_5] : memref<64x32xbf16, #tpu.memory_space<vmem>>, vector<64x32xbf16>
    %cst = arith.constant dense<0.000000e+00> : vector<16x32xf32>
    %6 = tpu.matmul %3, %5, %cst {dimension_numbers = #tpu.dot_dimension_numbers<[1], [0], [0], [1], [0, 0, 1, 1], [], []>} : vector<16x64xbf16>, vector<64x32xbf16>, vector<16x32xf32> -> vector<16x32xf32>
    %7 = arith.addf %4, %6 : vector<16x32xf32>
    %c0_6 = arith.constant 0 : index
    %c0_7 = arith.constant 0 : index
    %8 = vector.load %arg7[%c0_6, %c0_7] : memref<16x32xf32, #tpu.memory_space<vmem>>, vector<16x32xf32>
    tpu.vector_store %arg7[%c0_6, %c0_7], %7 {strides = array<i32>} : memref<16x32xf32, #tpu.memory_space<vmem>>, vector<16x32xf32>,
    %c0_i32_8 = arith.constant 0 : i32
    %9 = arith.cmpi eq, %arg2, %c0_i32_8 : i32
    %10 = arith.extui %9 : i1 to i32
    %c0_i32_9 = arith.constant 0 : i32
    %11 = arith.cmpi ne, %10, %c0_i32_9 : i32
    scf.if %11 {
      %c0_10 = arith.constant 0 : index
      %c0_11 = arith.constant 0 : index
      %12 = vector.load %arg7[%c0_10, %c0_11] : memref<16x32xf32, #tpu.memory_space<vmem>>, vector<16x32xf32>
      %c0_12 = arith.constant 0 : index
      %c0_13 = arith.constant 0 : index
      %13 = vector.load %arg5[%c0_12, %c0_13] : memref<16x32xbf16, #tpu.memory_space<vmem>>, vector<16x32xbf16>
      %14 = arith.extf %13 : vector<16x32xbf16> to vector<16x32xf32>
      %15 = arith.addf %12, %14 : vector<16x32xf32>
      %16 = arith.truncf %15 : vector<16x32xf32> to vector<16x32xbf16>
      %c0_14 = arith.constant 0 : index
      %c0_15 = arith.constant 0 : index
      %17 = vector.load %arg6[%c0_14, %c0_15] : memref<16x32xbf16, #tpu.memory_space<vmem>>, vector<16x32xbf16>
      tpu.vector_store %arg6[%c0_14, %c0_15], %16 {strides = array<i32>} : memref<16x32xbf16, #tpu.memory_space<vmem>>, vector<16x32xbf16>,
    } else {
    }
    return
  }
  func.func @transform_0(%arg0: i32, %arg1: i32, %arg2: i32) -> (i32, i32) {
    %c0_i32 = arith.constant 0 : i32
    return %arg0, %arg2 : i32, i32
  }
  func.func @transform_1(%arg0: i32, %arg1: i32, %arg2: i32) -> (i32, i32) {
    %c0_i32 = arith.constant 0 : i32
    return %arg2, %arg1 : i32, i32
  }
  func.func @transform_2(%arg0: i32, %arg1: i32, %arg2: i32) -> (i32, i32) {
    %c0_i32 = arith.constant 0 : i32
    return %arg0, %arg1 : i32, i32
  }
  func.func @transform_3(%arg0: i32, %arg1: i32, %arg2: i32) -> (i32, i32) {
    %c0_i32 = arith.constant 0 : i32
    return %arg0, %arg1 : i32, i32
  }
}

module attributes {stable_mosaic.version = 11 : i64} {
  func.func @_linear_kernel(%arg0: i32, %arg1: i32, %arg2: i32, %arg3: memref<16x32xbf16, #tpu.memory_space<vmem>>, %arg4: memref<16x1xf32, #tpu.memory_space<vmem>>, %arg5: memref<32x64xbf16, #tpu.memory_space<vmem>>, %arg6: memref<16x64xbf16, #tpu.memory_space<vmem>>, %arg7: memref<16x64xf32, #tpu.memory_space<vmem>>) attributes {dimension_semantics = [#tpu.dimension_semantics<parallel>, #tpu.dimension_semantics<parallel>, #tpu.dimension_semantics<arbitrary>], iteration_bounds = array<i64: 1, 1, 1>, scalar_prefetch = 0 : i64, scratch_operands = 1 : i64, tpu.core_type = #tpu.core_type<tc>, window_params = [{transform_indices = @transform_0, window_bounds = array<i64: 16, 32>}, {transform_indices = @transform_1, window_bounds = array<i64: 16, 1>}, {transform_indices = @transform_2, window_bounds = array<i64: 32, 64>}, {transform_indices = @transform_3, window_bounds = array<i64: 16, 64>}]} {
    %c0_i32 = arith.constant 0 : i32
    %0 = arith.cmpi eq, %arg2, %c0_i32 : i32
    %1 = arith.extui %0 : i1 to i32
    %c0_i32_0 = arith.constant 0 : i32
    %2 = arith.cmpi ne, %1, %c0_i32_0 : i32
    scf.if %2 {
      %cst_12 = arith.constant 0.000000e+00 : f32
      %17 = vector.broadcast %cst_12 : f32 to vector<16x64xf32>
      %c0_13 = arith.constant 0 : index
      %c0_14 = arith.constant 0 : index
      %18 = vector.load %arg7[%c0_13, %c0_14] : memref<16x64xf32, #tpu.memory_space<vmem>>, vector<16x64xf32>
      tpu.vector_store %arg7[%c0_13, %c0_14], %17 {strides = array<i32>} : memref<16x64xf32, #tpu.memory_space<vmem>>, vector<16x64xf32>,
    } else {
    }
    %c0 = arith.constant 0 : index
    %c0_1 = arith.constant 0 : index
    %3 = vector.load %arg3[%c0, %c0_1] : memref<16x32xbf16, #tpu.memory_space<vmem>>, vector<16x32xbf16>
    %4 = arith.extf %3 : vector<16x32xbf16> to vector<16x32xf32>
    %c0_2 = arith.constant 0 : index
    %c0_3 = arith.constant 0 : index
    %5 = vector.load %arg4[%c0_2, %c0_3] : memref<16x1xf32, #tpu.memory_space<vmem>>, vector<16x1xf32>
    %6 = vector.broadcast %5 : vector<16x1xf32> to vector<16x32xf32>
    %7 = arith.mulf %4, %6 : vector<16x32xf32>
    %c0_4 = arith.constant 0 : index
    %c0_5 = arith.constant 0 : index
    %8 = vector.load %arg7[%c0_4, %c0_5] : memref<16x64xf32, #tpu.memory_space<vmem>>, vector<16x64xf32>
    %9 = arith.truncf %7 : vector<16x32xf32> to vector<16x32xbf16>
    %c0_6 = arith.constant 0 : index
    %c0_7 = arith.constant 0 : index
    %10 = vector.load %arg5[%c0_6, %c0_7] : memref<32x64xbf16, #tpu.memory_space<vmem>>, vector<32x64xbf16>
    %cst = arith.constant dense<0.000000e+00> : vector<16x64xf32>
    %11 = tpu.matmul %9, %10, %cst {dimension_numbers = #tpu.dot_dimension_numbers<[1], [0], [0], [1], [0, 0, 1, 1], [], []>} : vector<16x32xbf16>, vector<32x64xbf16>, vector<16x64xf32> -> vector<16x64xf32>
    %12 = arith.addf %8, %11 : vector<16x64xf32>
    %c0_8 = arith.constant 0 : index
    %c0_9 = arith.constant 0 : index
    %13 = vector.load %arg7[%c0_8, %c0_9] : memref<16x64xf32, #tpu.memory_space<vmem>>, vector<16x64xf32>
    tpu.vector_store %arg7[%c0_8, %c0_9], %12 {strides = array<i32>} : memref<16x64xf32, #tpu.memory_space<vmem>>, vector<16x64xf32>,
    %c0_i32_10 = arith.constant 0 : i32
    %14 = arith.cmpi eq, %arg2, %c0_i32_10 : i32
    %15 = arith.extui %14 : i1 to i32
    %c0_i32_11 = arith.constant 0 : i32
    %16 = arith.cmpi ne, %15, %c0_i32_11 : i32
    scf.if %16 {
      %c0_12 = arith.constant 0 : index
      %c0_13 = arith.constant 0 : index
      %17 = vector.load %arg7[%c0_12, %c0_13] : memref<16x64xf32, #tpu.memory_space<vmem>>, vector<16x64xf32>
      %cst_14 = arith.constant 5.000000e-01 : f32
      %18 = vector.broadcast %cst_14 : f32 to vector<16x64xf32>
      %19 = arith.mulf %18, %17 : vector<16x64xf32>
      %cst_15 = arith.constant 0.707106769 : f32
      %20 = vector.broadcast %cst_15 : f32 to vector<16x64xf32>
      %21 = arith.mulf %17, %20 : vector<16x64xf32>
      %22 = math.absf %21 : vector<16x64xf32>
      %cst_16 = arith.constant 0.327591091 : f32
      %23 = vector.broadcast %cst_16 : f32 to vector<16x64xf32>
      %24 = arith.mulf %23, %22 : vector<16x64xf32>
      %cst_17 = arith.constant 1.000000e+00 : f32
      %25 = vector.broadcast %cst_17 : f32 to vector<16x64xf32>
      %26 = arith.addf %25, %24 : vector<16x64xf32>
      %cst_18 = arith.constant 1.000000e+00 : f32
      %27 = vector.broadcast %cst_18 : f32 to vector<16x64xf32>
      %28 = arith.divf %27, %26 : vector<16x64xf32>
      %cst_19 = arith.constant 1.06140542 : f32
      %29 = vector.broadcast %cst_19 : f32 to vector<16x64xf32>
      %30 = arith.mulf %29, %28 : vector<16x64xf32>
      %cst_20 = arith.constant -1.45315206 : f32
      %31 = vector.broadcast %cst_20 : f32 to vector<16x64xf32>
      %32 = arith.addf %30, %31 : vector<16x64xf32>
      %33 = arith.mulf %32, %28 : vector<16x64xf32>
      %cst_21 = arith.constant 1.42141378 : f32
      %34 = vector.broadcast %cst_21 : f32 to vector<16x64xf32>
      %35 = arith.addf %33, %34 : vector<16x64xf32>
      %36 = arith.mulf %35, %28 : vector<16x64xf32>
      %cst_22 = arith.constant -0.284496725 : f32
      %37 = vector.broadcast %cst_22 : f32 to vector<16x64xf32>
      %38 = arith.addf %36, %37 : vector<16x64xf32>
      %39 = arith.mulf %38, %28 : vector<16x64xf32>
      %cst_23 = arith.constant 0.254829586 : f32
      %40 = vector.broadcast %cst_23 : f32 to vector<16x64xf32>
      %41 = arith.addf %39, %40 : vector<16x64xf32>
      %42 = arith.mulf %41, %28 : vector<16x64xf32>
      %cst_24 = arith.constant 0.000000e+00 : f32
      %43 = vector.broadcast %cst_24 : f32 to vector<16x64xf32>
      %44 = arith.subf %43, %22 : vector<16x64xf32>
      %45 = arith.mulf %44, %22 : vector<16x64xf32>
      %46 = math.exp %45 : vector<16x64xf32>
      %47 = arith.mulf %42, %46 : vector<16x64xf32>
      %cst_25 = arith.constant 1.000000e+00 : f32
      %48 = vector.broadcast %cst_25 : f32 to vector<16x64xf32>
      %49 = arith.subf %48, %47 : vector<16x64xf32>
      %cst_26 = arith.constant 0.000000e+00 : f32
      %50 = vector.broadcast %cst_26 : f32 to vector<16x64xf32>
      %51 = arith.cmpf oge, %21, %50 : vector<16x64xf32>
      %cst_27 = arith.constant 0.000000e+00 : f32
      %52 = vector.broadcast %cst_27 : f32 to vector<16x64xf32>
      %53 = arith.subf %52, %49 : vector<16x64xf32>
      %54 = arith.select %51, %49, %53 : vector<16x64xi1>, vector<16x64xf32>
      %cst_28 = arith.constant 1.000000e+00 : f32
      %55 = vector.broadcast %cst_28 : f32 to vector<16x64xf32>
      %56 = arith.addf %55, %54 : vector<16x64xf32>
      %57 = arith.mulf %19, %56 : vector<16x64xf32>
      %58 = arith.truncf %57 : vector<16x64xf32> to vector<16x64xbf16>
      %c0_29 = arith.constant 0 : index
      %c0_30 = arith.constant 0 : index
      %59 = vector.load %arg6[%c0_29, %c0_30] : memref<16x64xbf16, #tpu.memory_space<vmem>>, vector<16x64xbf16>
      tpu.vector_store %arg6[%c0_29, %c0_30], %58 {strides = array<i32>} : memref<16x64xbf16, #tpu.memory_space<vmem>>, vector<16x64xbf16>,
    } else {
    }
    return
  }
  func.func @transform_0(%arg0: i32, %arg1: i32, %arg2: i32) -> (i32, i32) {
    %c0_i32 = arith.constant 0 : i32
    return %arg0, %arg2 : i32, i32
  }
  func.func @transform_1(%arg0: i32, %arg1: i32, %arg2: i32) -> (i32, i32) {
    %c0_i32 = arith.constant 0 : i32
    %c0_i32_0 = arith.constant 0 : i32
    return %arg0, %c0_i32 : i32, i32
  }
  func.func @transform_2(%arg0: i32, %arg1: i32, %arg2: i32) -> (i32, i32) {
    %c0_i32 = arith.constant 0 : i32
    return %arg2, %arg1 : i32, i32
  }
  func.func @transform_3(%arg0: i32, %arg1: i32, %arg2: i32) -> (i32, i32) {
    %c0_i32 = arith.constant 0 : i32
    return %arg0, %arg1 : i32, i32
  }
}

module attributes {stable_mosaic.version = 11 : i64} {
  func.func @_linear_kernel(%arg0: i32, %arg1: i32, %arg2: i32, %arg3: memref<16x32xbf16, #tpu.memory_space<vmem>>, %arg4: memref<16x1xf32, #tpu.memory_space<vmem>>, %arg5: memref<32x128xbf16, #tpu.memory_space<vmem>>, %arg6: memref<1x128xf32, #tpu.memory_space<vmem>>, %arg7: memref<16x128xf32, #tpu.memory_space<vmem>>, %arg8: memref<16x128xf32, #tpu.memory_space<vmem>>) attributes {dimension_semantics = [#tpu.dimension_semantics<parallel>, #tpu.dimension_semantics<parallel>, #tpu.dimension_semantics<arbitrary>], iteration_bounds = array<i64: 1, 1, 1>, scalar_prefetch = 0 : i64, scratch_operands = 1 : i64, tpu.core_type = #tpu.core_type<tc>, window_params = [{transform_indices = @transform_0, window_bounds = array<i64: 16, 32>}, {transform_indices = @transform_1, window_bounds = array<i64: 16, 1>}, {transform_indices = @transform_2, window_bounds = array<i64: 32, 128>}, {transform_indices = @transform_3, window_bounds = array<i64: 1, 128>}, {transform_indices = @transform_4, window_bounds = array<i64: 16, 128>}]} {
    %c0_i32 = arith.constant 0 : i32
    %0 = arith.cmpi eq, %arg2, %c0_i32 : i32
    %1 = arith.extui %0 : i1 to i32
    %c0_i32_0 = arith.constant 0 : i32
    %2 = arith.cmpi ne, %1, %c0_i32_0 : i32
    scf.if %2 {
      %cst_12 = arith.constant 0.000000e+00 : f32
      %17 = vector.broadcast %cst_12 : f32 to vector<16x128xf32>
      %c0_13 = arith.constant 0 : index
      %c0_14 = arith.constant 0 : index
      %18 = vector.load %arg8[%c0_13, %c0_14] : memref<16x128xf32, #tpu.memory_space<vmem>>, vector<16x128xf32>
      tpu.vector_store %arg8[%c0_13, %c0_14], %17 {strides = array<i32>} : memref<16x128xf32, #tpu.memory_space<vmem>>, vector<16x128xf32>,
    } else {
    }
    %c0 = arith.constant 0 : index
    %c0_1 = arith.constant 0 : index
    %3 = vector.load %arg3[%c0, %c0_1] : memref<16x32xbf16, #tpu.memory_space<vmem>>, vector<16x32xbf16>
    %4 = arith.extf %3 : vector<16x32xbf16> to vector<16x32xf32>
    %c0_2 = arith.constant 0 : index
    %c0_3 = arith.constant 0 : index
    %5 = vector.load %arg4[%c0_2, %c0_3] : memref<16x1xf32, #tpu.memory_space<vmem>>, vector<16x1xf32>
    %6 = vector.broadcast %5 : vector<16x1xf32> to vector<16x32xf32>
    %7 = arith.mulf %4, %6 : vector<16x32xf32>
    %c0_4 = arith.constant 0 : index
    %c0_5 = arith.constant 0 : index
    %8 = vector.load %arg8[%c0_4, %c0_5] : memref<16x128xf32, #tpu.memory_space<vmem>>, vector<16x128xf32>
    %9 = arith.truncf %7 : vector<16x32xf32> to vector<16x32xbf16>
    %c0_6 = arith.constant 0 : index
    %c0_7 = arith.constant 0 : index
    %10 = vector.load %arg5[%c0_6, %c0_7] : memref<32x128xbf16, #tpu.memory_space<vmem>>, vector<32x128xbf16>
    %cst = arith.constant dense<0.000000e+00> : vector<16x128xf32>
    %11 = tpu.matmul %9, %10, %cst {dimension_numbers = #tpu.dot_dimension_numbers<[1], [0], [0], [1], [0, 0, 1, 1], [], []>} : vector<16x32xbf16>, vector<32x128xbf16>, vector<16x128xf32> -> vector<16x128xf32>
    %12 = arith.addf %8, %11 : vector<16x128xf32>
    %c0_8 = arith.constant 0 : index
    %c0_9 = arith.constant 0 : index
    %13 = vector.load %arg8[%c0_8, %c0_9] : memref<16x128xf32, #tpu.memory_space<vmem>>, vector<16x128xf32>
    tpu.vector_store %arg8[%c0_8, %c0_9], %12 {strides = array<i32>} : memref<16x128xf32, #tpu.memory_space<vmem>>, vector<16x128xf32>,
    %c0_i32_10 = arith.constant 0 : i32
    %14 = arith.cmpi eq, %arg2, %c0_i32_10 : i32
    %15 = arith.extui %14 : i1 to i32
    %c0_i32_11 = arith.constant 0 : i32
    %16 = arith.cmpi ne, %15, %c0_i32_11 : i32
    scf.if %16 {
      %c0_12 = arith.constant 0 : index
      %c0_13 = arith.constant 0 : index
      %17 = vector.load %arg8[%c0_12, %c0_13] : memref<16x128xf32, #tpu.memory_space<vmem>>, vector<16x128xf32>
      %c0_14 = arith.constant 0 : index
      %c0_15 = arith.constant 0 : index
      %18 = vector.load %arg6[%c0_14, %c0_15] : memref<1x128xf32, #tpu.memory_space<vmem>>, vector<1x128xf32>
      %19 = vector.broadcast %18 : vector<1x128xf32> to vector<16x128xf32>
      %20 = arith.addf %17, %19 : vector<16x128xf32>
      %c0_16 = arith.constant 0 : index
      %c0_17 = arith.constant 0 : index
      %21 = vector.load %arg7[%c0_16, %c0_17] : memref<16x128xf32, #tpu.memory_space<vmem>>, vector<16x128xf32>
      tpu.vector_store %arg7[%c0_16, %c0_17], %20 {strides = array<i32>} : memref<16x128xf32, #tpu.memory_space<vmem>>, vector<16x128xf32>,
    } else {
    }
    return
  }
  func.func @transform_0(%arg0: i32, %arg1: i32, %arg2: i32) -> (i32, i32) {
    %c0_i32 = arith.constant 0 : i32
    return %arg0, %arg2 : i32, i32
  }
  func.func @transform_1(%arg0: i32, %arg1: i32, %arg2: i32) -> (i32, i32) {
    %c0_i32 = arith.constant 0 : i32
    %c0_i32_0 = arith.constant 0 : i32
    return %arg0, %c0_i32 : i32, i32
  }
  func.func @transform_2(%arg0: i32, %arg1: i32, %arg2: i32) -> (i32, i32) {
    %c0_i32 = arith.constant 0 : i32
    return %arg2, %arg1 : i32, i32
  }
  func.func @transform_3(%arg0: i32, %arg1: i32, %arg2: i32) -> (i32, i32) {
    %c0_i32 = arith.constant 0 : i32
    %c0_i32_0 = arith.constant 0 : i32
    return %c0_i32, %arg1 : i32, i32
  }
  func.func @transform_4(%arg0: i32, %arg1: i32, %arg2: i32) -> (i32, i32) {
    %c0_i32 = arith.constant 0 : i32
    return %arg0, %arg1 : i32, i32
  }
}

</mosaic_0001>

<bundles_post_ra>
// kernel: llm_forward.17
= control target key start
LH: loop header
LB: loop body
LE: loop exit
PB: predicated region body
PF: predicated region fallthrough
CT: control target
= control target key end

     0   :  { %v114_v0 = vmov 0   ;;  %vm19_vm0 = vcmask 785408   ;;  %v115_v5 = vmov 0.0   ;;  %vm59_vm1 = vcmask 261120   ;;  %s161_s1 = inlined_call_operand.vmem [shape: f32[16,1], index: 1, kind: input, shape index: {}]   ;;  %s162_s2 = inlined_call_operand.vmem [shape: bf16[32,96], index: 2, kind: input, shape index: {}]   ;;  %s163_s0 = inlined_call_operand.vmem [shape: bf16[16,32], index: 0, kind: input, shape index: {}]   ;;  %s164_s3 = inlined_call_operand.vmem [shape: bf16[16,96], index: 3, kind: output, shape index: {}]  }
   0x1   :  { %113 = vset.pattern.permute.xlu0 %v114_v0  ;;  %v26_v1 = vld [vmem:[%s161_s1] sm:$0xff]  ;;  %v27_v2 = vld [vmem:[%s161_s1 + $0x8] sm:$0xff]  ;;  %20 = vst.msk [vmem:[#allocation2] sm:$0xff] %vm19_vm0, %v115_v5  ;;  %vm89_vm2 = vcmask 781312  }
   0x2   :  { %30 = vperm.xlu0 %113, %v26_v1   ;;  %v106_v3 = vld [vmem:[%s162_s2 + $0x8] sm:$0xff]  ;;  %v105_v4 = vld [vmem:[%s162_s2] sm:$0xff]  ;;  %21 = vst.msk [vmem:[#allocation2 + $0x8] sm:$0xff] %vm19_vm0, %v115_v5 }
   0x3   :  { %69 = vmatpush.bf16.msra.mxu0 %v106_v3  ;;  %v108_v7 = vld [vmem:[%s163_s0] sm:$0xff]  }
   0x4   :  { %v109_v8 = vunpack.c.l.bf16 %v108_v7  ;;  %v110_v9 = vunpack.c.h.bf16 %v108_v7 }
   0x7   :  { %70 = vmatpush.bf16.msra.mxu0 %v105_v4 }
   0x8   :  { %v40_v14 = vld [vmem:[#allocation2] sm:$0xff] }
   0x9   :  { %v41_v17 = vld [vmem:[#allocation2 + $0x8] sm:$0xff] }
   0xa   :  { %35 = vperm.xlu0 %113, %v27_v2  }
  0x74   :  { %v31_v6 = vpop.permute.xlu0 %30 }
  0x75   :  { %v38_v11 = vmul.f32 %v109_v8, %v31_v6 }
  0x7c   :  { %v36_v10 = vpop.permute.xlu0 %35 }
  0x7d   :  { %v39_v12 = vmul.f32 %v110_v9, %v36_v10 }
  0x7f   :  { %v42_v13 = vpack.c.bf16 %v39_v12, %v38_v11 }
  0x81   :  { %104 = vmatmul.msk.bf16.vlgmr.msra.gmra.mxu0 %vm59_vm1, %v42_v13 }
  0xfe   :  { %v72_v15 = vpop.f32.mrf.mxu0 }
  0xff   :  { %v77_v16 = vadd.f32 %v72_v15, %v40_v14 }
 0x101   :  { %80 = vst.msk [vmem:[#allocation2] sm:$0xff] %vm19_vm0, %v77_v16 }
 0x106   :  { %v74_v18 = vpop.f32.mrf.mxu0 }
 0x107   :  { %v78_v19 = vadd.f32 %v74_v18, %v41_v17 }
 0x108   :  { %v85_v20 = vld [vmem:[#allocation2] sm:$0xff] }
 0x109   :  { %v87_v21 = vpack.c.bf16 %v85_v20, %v85_v20  ;;  %81 = vst.msk [vmem:[#allocation2 + $0x8] sm:$0xff] %vm19_vm0, %v78_v19 }
 0x10b   :  { %90 = vst.msk [vmem:[%s164_s3] sm:$0xf] %vm89_vm2, %v87_v21 }
 0x110   :  { %v86_v22 = vld [vmem:[#allocation2 + $0x8] sm:$0xff] }
 0x111   :  { %v88_v23 = vpack.c.bf16 %v86_v22, %v86_v22 }
 0x113   :  { %91 = vst.msk [vmem:[%s164_s3 + $0x4] sm:$0xf] %vm89_vm2, %v88_v23 }

// kernel: llm_forward.19
= control target key start
LH: loop header
LB: loop body
LE: loop exit
PB: predicated region body
PF: predicated region fallthrough
CT: control target
= control target key end

     0   :  { %vm19_vm0 = vcmask 261120   ;;  %v110_v1 = vmov 0.0   ;;  %vm82_vm1 = vcmask 257024   ;;  %s154_s1 = inlined_call_operand.vmem [shape: bf16[32,32], index: 1, kind: input, shape index: {}]   ;;  %s155_s0 = inlined_call_operand.vmem [shape: bf16[16,32], index: 0, kind: input, shape index: {}]   ;;  %s156_s2 = inlined_call_operand.vmem [shape: bf16[16,32], index: 2, kind: input, shape index: {}]   ;;  %s157_s3 = inlined_call_operand.vmem [shape: bf16[16,32], index: 3, kind: output, shape index: {}]  }
   0x1   :  { %v104_v0 = vld [vmem:[%s154_s1 + $0x8] sm:$0xff]  ;;  %20 = vst.msk [vmem:[#allocation2] sm:$0xff] %vm19_vm0, %v110_v1  ;;  %v103_v2 = vld [vmem:[%s154_s1] sm:$0xff] }
   0x2   :  { %21 = vst.msk [vmem:[#allocation2 + $0x8] sm:$0xff] %vm19_vm0, %v110_v1  ;;  %57 = vmatpush.bf16.msra.mxu0 %v104_v0  ;;  %v102_v3 = vld [vmem:[%s155_s0] sm:$0xff] }
   0x3   :  { %v106_v7 = vld [vmem:[%s156_s2] sm:$0xff]  }
   0x4   :  { %v107_v9 = vunpack.c.l.bf16 %v106_v7  ;;  %v108_v15 = vunpack.c.h.bf16 %v106_v7 }
   0x6   :  { %58 = vmatpush.bf16.msra.mxu0 %v103_v2 }
   0x8   :  { %v24_v4 = vld [vmem:[#allocation2] sm:$0xff] }
   0x9   :  { %101 = vmatmul.msk.bf16.vlgmr.msra.gmra.mxu0 %vm19_vm0, %v102_v3  ;;  %v25_v8 = vld [vmem:[#allocation2 + $0x8] sm:$0xff] }
  0x86   :  { %v60_v5 = vpop.f32.mrf.mxu0 }
  0x87   :  { %v65_v6 = vadd.f32 %v60_v5, %v24_v4 }
  0x89   :  { %67 = vst.msk [vmem:[#allocation2] sm:$0xff] %vm19_vm0, %v65_v6 }
  0x8e   :  { %v62_v10 = vpop.f32.mrf.mxu0 }
  0x8f   :  { %v66_v11 = vadd.f32 %v62_v10, %v25_v8 }
  0x90   :  { %v72_v12 = vld [vmem:[#allocation2] sm:$0xff] }
  0x91   :  { %v78_v13 = vadd.f32 %v107_v9, %v72_v12  ;;  %68 = vst.msk [vmem:[#allocation2 + $0x8] sm:$0xff] %vm19_vm0, %v66_v11 }
  0x93   :  { %v80_v14 = vpack.c.bf16 %v78_v13, %v78_v13 }
  0x95   :  { %83 = vst.msk [vmem:[%s157_s3] sm:$0xf] %vm82_vm1, %v80_v14 }
  0x98   :  { %v73_v16 = vld [vmem:[#allocation2 + $0x8] sm:$0xff] }
  0x99   :  { %v79_v17 = vadd.f32 %v108_v15, %v73_v16 }
  0x9b   :  { %v81_v18 = vpack.c.bf16 %v79_v17, %v79_v17 }
  0x9d   :  { %84 = vst.msk [vmem:[%s157_s3 + $0x4] sm:$0xf] %vm82_vm1, %v81_v18 }

// kernel: llm_forward.16
= control target key start
LH: loop header
LB: loop body
LE: loop exit
PB: predicated region body
PF: predicated region fallthrough
CT: control target
= control target key end

     0   :  { %vm14_vm0 = vcmask 261120   ;;  %v70_v7 = vmov 32.0   ;;  %vm52_vm3 = vcmask 7168   ;;  %s90_s0 = inlined_call_operand.vmem [shape: bf16[16,32], index: 0, kind: input, shape index: {}]   ;;  %s91_s1 = inlined_call_operand.vmem [shape: f32[16,1], index: 1, kind: output, shape index: {}]  }
   0x1   :  { %v60_v0 = vld [vmem:[%s90_s0] sm:$0xff]   ;;  %64 = vrcp.f32 %v70_v7 }
   0x2   :  { %v61_v1 = vunpack.c.l.bf16 %v60_v0  ;;  %v62_v3 = vunpack.c.h.bf16 %v60_v0 }
   0x4   :  { %v12_v2 = vmul.f32 %v61_v1, %v61_v1  ;;  %v13_v5 = vmul.f32 %v62_v3, %v62_v3 }
   0x6   :  { %v15_v4 = vsel %vm14_vm0, %v12_v2, 0.0  ;;  %v18_v6 = vsel %vm14_vm0, %v13_v5, 0.0 }
   0x7   :  { %16 = vadd.xlane.f32.xlu0 %v15_v4  ;;  %v65_v8 = vpop.eup %64 }
   0x8   :  { %v22_v9 = vmul.f32 32.0, %v65_v8  ;;  %vm26_vm1 = vweird.f32 %v65_v8 }
   0xa   :  { %v23_v10 = vsub.f32 1.0, %v22_v9 }
   0xc   :  { %v24_v11 = vmul.f32 %v65_v8, %v23_v10 }
   0xe   :  { %v25_v12 = vadd.f32 %v65_v8, %v24_v11 }
   0xf   :  { %19 = vadd.xlane.f32.xlu0 %v18_v6 }
  0x10   :  { %v27_v13 = vsel %vm26_vm1, %v65_v8, %v25_v12 }
  0x7a   :  { %v17_v14 = vpop.xlane.xlu0 %16 }
  0x7b   :  { %v28_v15 = vmul.f32 %v27_v13, %v17_v14 }
  0x7d   :  { %v30_v16 = vadd.f32 1e-06, %v28_v15 }
  0x7f   :  { %66 = vrsqrt.f32 %v30_v16  ;;  %vm38_vm4 = vweird.f32 %v30_v16 }
  0x82   :  { %v20_v17 = vpop.xlane.xlu0 %19 }
  0x83   :  { %v29_v18 = vmul.f32 %v27_v13, %v20_v17 }
  0x85   :  { %v67_v19 = vpop.eup %66  ;;  %v31_v20 = vadd.f32 1e-06, %v29_v18 }
  0x86   :  { %v33_v21 = vmul.f32 %v67_v19, %v30_v16  ;;  %vm39_vm2 = vweird.f32 %v67_v19 }
  0x87   :  { %68 = vrsqrt.f32 %v31_v20  ;;  %vm40_vm5 = vmor %vm38_vm4, %vm39_vm2  ;;  %vm48_vm7 = vweird.f32 %v31_v20 }
  0x88   :  { %v34_v22 = vmul.f32 %v67_v19, %v33_v21 }
  0x8a   :  { %v35_v23 = vmul.f32 0.5, %v34_v22 }
  0x8c   :  { %v36_v24 = vsub.f32 1.5, %v35_v23 }
  0x8d   :  { %v69_v25 = vpop.eup %68 }
  0x8e   :  { %v37_v26 = vmul.f32 %v67_v19, %v36_v24  ;;  %v43_v27 = vmul.f32 %v69_v25, %v31_v20  ;;  %vm49_vm6 = vweird.f32 %v69_v25 }
  0x8f   :  { %vm50_vm8 = vmor %vm48_vm7, %vm49_vm6 }
  0x90   :  { %v41_v28 = vsel %vm40_vm5, %v67_v19, %v37_v26  ;;  %v44_v29 = vmul.f32 %v69_v25, %v43_v27 }
  0x91   :  { %53 = vst.msk [vmem:[%s91_s1] sm:$0xff] %vm52_vm3, %v41_v28 }
  0x92   :  { %v45_v30 = vmul.f32 0.5, %v44_v29 }
  0x94   :  { %v46_v31 = vsub.f32 1.5, %v45_v30 }
  0x96   :  { %v47_v32 = vmul.f32 %v69_v25, %v46_v31 }
  0x98   :  { %v51_v33 = vsel %vm50_vm8, %v69_v25, %v47_v32 }
  0x99   :  { %54 = vst.msk [vmem:[%s91_s1 + $0x8] sm:$0xff] %vm52_vm3, %v51_v33 }

// kernel: llm_forward.22
= control target key start
LH: loop header
LB: loop body
LE: loop exit
PB: predicated region body
PF: predicated region fallthrough
CT: control target
= control target key end

     0   :  { %vm19_vm0 = vcmask 261120   ;;  %v137_v1 = vmov 0.0   ;;  %vm63_vm1 = vcmask 523264   ;;  %vm99_vm2 = vcmask 257024   ;;  %s186_s1 = inlined_call_operand.vmem [shape: bf16[64,32], index: 1, kind: input, shape index: {}]   ;;  %s187_s0 = inlined_call_operand.vmem [shape: bf16[16,64], index: 0, kind: input, shape index: {}]   ;;  %s188_s2 = inlined_call_operand.vmem [shape: bf16[16,32], index: 2, kind: input, shape index: {}]   ;;  %s189_s3 = inlined_call_operand.vmem [shape: bf16[16,32], index: 3, kind: output, shape index: {}]  }
   0x1   :  { %v131_v0 = vld [vmem:[%s186_s1 + $0x18] sm:$0xff]  ;;  %20 = vst.msk [vmem:[#allocation2] sm:$0xff] %vm19_vm0, %v137_v1  ;;  %v130_v2 = vld [vmem:[%s186_s1 + $0x10] sm:$0xff]  ;;  %v129_v3 = vld [vmem:[%s186_s1 + $0x8] sm:$0xff] }
   0x2   :  { %21 = vst.msk [vmem:[#allocation2 + $0x8] sm:$0xff] %vm19_vm0, %v137_v1  ;;  %71 = vmatpush.bf16.msra.mxu0 %v131_v0  ;;  %v128_v4 = vld [vmem:[%s186_s1] sm:$0xff] }
   0x3   :  { %v127_v5 = vld [vmem:[%s187_s0] sm:$0xff] }
   0x4   :  { %v133_v9 = vld [vmem:[%s188_s2] sm:$0xff]  }
   0x5   :  { %v134_v11 = vunpack.c.l.bf16 %v133_v9  ;;  %v135_v17 = vunpack.c.h.bf16 %v133_v9 }
   0x6   :  { %72 = vmatpush.bf16.msra.mxu0 %v130_v2 }
   0x8   :  { %v24_v6 = vld [vmem:[#allocation2] sm:$0xff] }
   0x9   :  { %v25_v10 = vld [vmem:[#allocation2 + $0x8] sm:$0xff] }
   0xa   :  { %73 = vmatpush.bf16.msra.mxu0 %v129_v3 }
   0xe   :  { %74 = vmatpush.bf16.msra.mxu0 %v128_v4 }
  0x11   :  { %126 = vmatmul.msk.bf16.vlgmr.msra.gmra.mxu0 %vm63_vm1, %v127_v5 }
  0x8e   :  { %v76_v7 = vpop.f32.mrf.mxu0 }
  0x8f   :  { %v81_v8 = vadd.f32 %v76_v7, %v24_v6 }
  0x91   :  { %84 = vst.msk [vmem:[#allocation2] sm:$0xff] %vm19_vm0, %v81_v8 }
  0x96   :  { %v78_v12 = vpop.f32.mrf.mxu0 }
  0x97   :  { %v82_v13 = vadd.f32 %v78_v12, %v25_v10 }
  0x98   :  { %v89_v14 = vld [vmem:[#allocation2] sm:$0xff] }
  0x99   :  { %v95_v15 = vadd.f32 %v134_v11, %v89_v14  ;;  %85 = vst.msk [vmem:[#allocation2 + $0x8] sm:$0xff] %vm19_vm0, %v82_v13 }
  0x9b   :  { %v97_v16 = vpack.c.bf16 %v95_v15, %v95_v15 }
  0x9d   :  { %100 = vst.msk [vmem:[%s189_s3] sm:$0xf] %vm99_vm2, %v97_v16 }
  0xa0   :  { %v90_v18 = vld [vmem:[#allocation2 + $0x8] sm:$0xff] }
  0xa1   :  { %v96_v19 = vadd.f32 %v135_v17, %v90_v18 }
  0xa3   :  { %v98_v20 = vpack.c.bf16 %v96_v19, %v96_v19 }
  0xa5   :  { %101 = vst.msk [vmem:[%s189_s3 + $0x4] sm:$0xf] %vm99_vm2, %v98_v20 }

// kernel: llm_forward.21
= control target key start
LH: loop header
LB: loop body
LE: loop exit
PB: predicated region body
PF: predicated region fallthrough
CT: control target
= control target key end

     0   :  { %v202_v0 = vmov 0   ;;  %vm19_vm0 = vcmask 523264   ;;  %v203_v5 = vmov 0.0   ;;  %vm59_vm1 = vcmask 261120   ;;  %s265_s1 = inlined_call_operand.vmem [shape: f32[16,1], index: 1, kind: input, shape index: {}]   ;;  %s266_s2 = inlined_call_operand.vmem [shape: bf16[32,64], index: 2, kind: input, shape index: {}]   ;;  %s267_s0 = inlined_call_operand.vmem [shape: bf16[16,32], index: 0, kind: input, shape index: {}]   ;;  %s268_s3 = inlined_call_operand.vmem [shape: bf16[16,64], index: 3, kind: output, shape index: {}]  }
   0x1   :  { %193 = vset.pattern.permute.xlu0 %v202_v0  ;;  %v26_v1 = vld [vmem:[%s265_s1] sm:$0xff]  ;;  %v27_v2 = vld [vmem:[%s265_s1 + $0x8] sm:$0xff]  ;;  %20 = vst.msk [vmem:[#allocation2] sm:$0xff] %vm19_vm0, %v203_v5  ;;  %vm169_vm11 = vcmask 519168  }
   0x2   :  { %30 = vperm.xlu0 %193, %v26_v1   ;;  %v186_v3 = vld [vmem:[%s266_s2 + $0x8] sm:$0xff]  ;;  %v185_v4 = vld [vmem:[%s266_s2] sm:$0xff]  ;;  %21 = vst.msk [vmem:[#allocation2 + $0x8] sm:$0xff] %vm19_vm0, %v203_v5 }
   0x3   :  { %69 = vmatpush.bf16.msra.mxu0 %v186_v3  ;;  %v188_v7 = vld [vmem:[%s267_s0] sm:$0xff]  }
   0x4   :  { %v189_v8 = vunpack.c.l.bf16 %v188_v7  ;;  %v190_v9 = vunpack.c.h.bf16 %v188_v7 }
   0x7   :  { %70 = vmatpush.bf16.msra.mxu0 %v185_v4 }
   0x8   :  { %v40_v14 = vld [vmem:[#allocation2] sm:$0xff] }
   0x9   :  { %v41_v17 = vld [vmem:[#allocation2 + $0x8] sm:$0xff] }
   0xa   :  { %35 = vperm.xlu0 %193, %v27_v2  }
  0x74   :  { %v31_v6 = vpop.permute.xlu0 %30 }
  0x75   :  { %v38_v11 = vmul.f32 %v189_v8, %v31_v6 }
  0x7c   :  { %v36_v10 = vpop.permute.xlu0 %35 }
  0x7d   :  { %v39_v12 = vmul.f32 %v190_v9, %v36_v10 }
  0x7f   :  { %v42_v13 = vpack.c.bf16 %v39_v12, %v38_v11 }
  0x81   :  { %184 = vmatmul.msk.bf16.vlgmr.msra.gmra.mxu0 %vm59_vm1, %v42_v13 }
  0xfe   :  { %v72_v15 = vpop.f32.mrf.mxu0 }
  0xff   :  { %v77_v16 = vadd.f32 %v72_v15, %v40_v14 }
 0x101   :  { %80 = vst.msk [vmem:[#allocation2] sm:$0xff] %vm19_vm0, %v77_v16 }
 0x106   :  { %v74_v18 = vpop.f32.mrf.mxu0 }
 0x107   :  { %v78_v19 = vadd.f32 %v74_v18, %v41_v17 }
 0x108   :  { %v242_v20 = vld [vmem:[#allocation2] sm:$0xff] }
 0x109   :  { %v245_v21 = vmul.f32 0.70710677, %v242_v20  ;;  %81 = vst.msk [vmem:[#allocation2 + $0x8] sm:$0xff] %vm19_vm0, %v78_v19  ;;  %v87_v14 = vmul.f32 0.5, %v242_v20 }
 0x10b   :  { %v91_v22 = vand.u32 2147483647, %v245_v21  ;;  %vm157_vm10 = vcmp.ge.f32.partialorder %v245_v21, 0.0 }
 0x10d   :  { %v93_v23 = vmul.f32 0.3275911, %v91_v22  ;;  %v145_v41 = vsub.f32 0.0, %v91_v22 }
 0x10f   :  { %v95_v24 = vadd.f32 1.0, %v93_v23  ;;  %v147_v47 = vmul.f32 %v145_v41, %v91_v22 }
 0x110   :  { %v249_v25 = vld [vmem:[#allocation2 + $0x8] sm:$0xff] }
 0x111   :  { %194 = vrcp.f32 %v95_v24  ;;  %v252_v26 = vmul.f32 0.70710677, %v249_v25  ;;  %v108_v33 = vand.u32 2147483648, %v95_v24  ;;  %v106_v35 = vand.u32 2147483647, %v95_v24 }
 0x112   :  { %vm102_vm3 = vweird.f32 %v95_v24  ;;  %v149_v54 = vmul.f32 1.442695, %v147_v47 }
 0x113   :  { %v92_v27 = vand.u32 2147483647, %v252_v26  ;;  %v109_v37 = vor.u32 1.1754944e-38, %v108_v33  ;;  %vm107_vm5 = vcmp.eq.f32.partialorder %v106_v35, 8.507059e+37  ;;  %vm158_vm12 = vcmp.ge.f32.partialorder %v252_v26, 0.0 }
 0x115   :  { %v94_v28 = vmul.f32 0.3275911, %v92_v27  ;;  %v146_v58 = vsub.f32 0.0, %v92_v27 }
 0x117   :  { %v195_v29 = vpop.eup %194  ;;  %v96_v31 = vadd.f32 1.0, %v94_v28  ;;  %v148_v63 = vmul.f32 %v146_v58, %v92_v27  ;;  %v88_v27 = vmul.f32 0.5, %v249_v25 }
 0x118   :  { %v98_v30 = vmul.f32 %v195_v29, %v95_v24  ;;  %vm103_vm2 = vweird.f32 %v195_v29 }
 0x119   :  { %196 = vrcp.f32 %v96_v31  ;;  %vm104_vm4 = vmor %vm102_vm3, %vm103_vm2  ;;  %v123_v46 = vand.u32 2147483648, %v96_v31  ;;  %v121_v49 = vand.u32 2147483647, %v96_v31  ;;  %vm117_vm7 = vweird.f32 %v96_v31 }
 0x11a   :  { %v99_v32 = vsub.f32 1.0, %v98_v30  ;;  %198 = vpow2.f32 %v149_v54  ;;  %v151_v4 = vmul.f32 1.442695, %v148_v63 }
 0x11b   :  { %v124_v53 = vor.u32 1.1754944e-38, %v123_v46  ;;  %vm122_vm9 = vcmp.eq.f32.partialorder %v121_v49, 8.507059e+37 }
 0x11c   :  { %v100_v34 = vmul.f32 %v195_v29, %v99_v32  ;;  %200 = vpow2.f32 %v151_v4 }
 0x11e   :  { %v101_v36 = vadd.f32 %v195_v29, %v100_v34 }
 0x11f   :  { %v197_v38 = vpop.eup %196 }
 0x120   :  { %v105_v39 = vsel %vm104_vm4, %v195_v29, %v101_v36  ;;  %v113_v42 = vmul.f32 %v197_v38, %v96_v31  ;;  %vm118_vm6 = vweird.f32 %v197_v38  ;;  %v199_v5 = vpop.eup %198 }
 0x121   :  { %v110_v40 = vsel %vm107_vm5, %v109_v37, %v105_v39  ;;  %vm119_vm8 = vmor %vm117_vm7, %vm118_vm6 }
 0x122   :  { %v127_v43 = vmul.f32 1.0614054, %v110_v40  ;;  %v114_v44 = vsub.f32 1.0, %v113_v42  ;;  %v201_v17 = vpop.eup %200 }
 0x124   :  { %v129_v45 = vadd.f32 -1.4531521, %v127_v43  ;;  %v115_v48 = vmul.f32 %v197_v38, %v114_v44 }
 0x126   :  { %v131_v50 = vmul.f32 %v129_v45, %v110_v40  ;;  %v116_v51 = vadd.f32 %v197_v38, %v115_v48 }
 0x128   :  { %v133_v52 = vadd.f32 1.4214138, %v131_v50  ;;  %v120_v55 = vsel %vm119_vm8, %v197_v38, %v116_v51 }
 0x129   :  { %v125_v57 = vsel %vm122_vm9, %v124_v53, %v120_v55 }
 0x12a   :  { %v135_v56 = vmul.f32 %v133_v52, %v110_v40  ;;  %v128_v59 = vmul.f32 1.0614054, %v125_v57 }
 0x12c   :  { %v137_v60 = vadd.f32 -0.28449672, %v135_v56  ;;  %v130_v61 = vadd.f32 -1.4531521, %v128_v59 }
 0x12e   :  { %v139_v62 = vmul.f32 %v137_v60, %v110_v40  ;;  %v132_v0 = vmul.f32 %v130_v61, %v125_v57 }
 0x130   :  { %v141_v1 = vadd.f32 0.2548296, %v139_v62  ;;  %v134_v2 = vadd.f32 1.4214138, %v132_v0 }
 0x132   :  { %v143_v3 = vmul.f32 %v141_v1, %v110_v40  ;;  %v136_v6 = vmul.f32 %v134_v2, %v125_v57 }
 0x134   :  { %v153_v7 = vmul.f32 %v199_v5, %v143_v3  ;;  %v138_v8 = vadd.f32 -0.28449672, %v136_v6 }
 0x136   :  { %v155_v9 = vsub.f32 1.0, %v153_v7  ;;  %v140_v10 = vmul.f32 %v138_v8, %v125_v57 }
 0x138   :  { %v159_v11 = vsub.f32 0.0, %v155_v9  ;;  %v142_v12 = vadd.f32 0.2548296, %v140_v10 }
 0x13a   :  { %v161_v13 = vsel %vm157_vm10, %v155_v9, %v159_v11  ;;  %v144_v16 = vmul.f32 %v142_v12, %v125_v57 }
 0x13b   :  { %v163_v15 = vadd.f32 1.0, %v161_v13 }
 0x13c   :  { %v154_v19 = vmul.f32 %v201_v17, %v144_v16 }
 0x13d   :  { %v165_v18 = vmul.f32 %v163_v15, %v87_v14 }
 0x13e   :  { %v156_v23 = vsub.f32 1.0, %v154_v19 }
 0x13f   :  { %v167_v22 = vpack.c.bf16 %v165_v18, %v165_v18 }
 0x140   :  { %v160_v24 = vsub.f32 0.0, %v156_v23 }
 0x141   :  { %170 = vst.msk [vmem:[%s268_s3] sm:$0xf] %vm169_vm11, %v167_v22 }
 0x142   :  { %v162_v21 = vsel %vm158_vm12, %v156_v23, %v160_v24 }
 0x143   :  { %v164_v28 = vadd.f32 1.0, %v162_v21 }
 0x145   :  { %v166_v20 = vmul.f32 %v164_v28, %v88_v27 }
 0x147   :  { %v168_v29 = vpack.c.bf16 %v166_v20, %v166_v20 }
 0x149   :  { %171 = vst.msk [vmem:[%s268_s3 + $0x4] sm:$0xf] %vm169_vm11, %v168_v29 }

// kernel: llm_forward.31
= control target key start
LH: loop header
LB: loop body
LE: loop exit
PB: predicated region body
PF: predicated region fallthrough
CT: control target
= control target key end

     0   :  { %v118_v0 = vmov 0   ;;  %vm61_vm0 = vcmask 261120   ;;  %s168_s1 = inlined_call_operand.vmem [shape: f32[16,1], index: 1, kind: input, shape index: {}]   ;;  %s169_s3 = inlined_call_operand.vmem [shape: f32[1,128], index: 3, kind: input, shape index: {}]   ;;  %s170_s2 = inlined_call_operand.vmem [shape: bf16[32,128], index: 2, kind: input, shape index: {}]   ;;  %s171_s0 = inlined_call_operand.vmem [shape: bf16[16,32], index: 0, kind: input, shape index: {}]   ;;  %s172_s4 = inlined_call_operand.vmem [shape: f32[16,128], index: 4, kind: output, shape index: {}]  }
   0x1   :  { %116 = vset.pattern.permute.xlu0 %v118_v0  ;;  %v28_v1 = vld [vmem:[%s168_s1] sm:$0xff]  ;;  %v29_v2 = vld [vmem:[%s168_s1 + $0x8] sm:$0xff] }
   0x2   :  { %32 = vperm.xlu0 %116, %v28_v1   ;;  %v110_v3 = vld [vmem:[%s170_s2 + $0x8] sm:$0xff]  ;;  %v109_v4 = vld [vmem:[%s170_s2] sm:$0xff] }
   0x3   :  { %71 = vmatpush.bf16.msra.mxu0 %v110_v3  ;;  %v112_v6 = vld [vmem:[%s171_s0] sm:$0xff]  }
   0x4   :  { %v113_v7 = vunpack.c.l.bf16 %v112_v6  ;;  %v114_v8 = vunpack.c.h.bf16 %v112_v6  ;;  %v117_v13 = vld [vmem:[%s169_s3] ss:$0 sm:$0xff] }
   0x7   :  { %72 = vmatpush.bf16.msra.mxu0 %v109_v4 }
   0xa   :  { %37 = vperm.xlu0 %116, %v29_v2  }
  0x74   :  { %v33_v5 = vpop.permute.xlu0 %32 }
  0x75   :  { %v40_v10 = vmul.f32 %v113_v7, %v33_v5 }
  0x7c   :  { %v38_v9 = vpop.permute.xlu0 %37 }
  0x7d   :  { %v41_v11 = vmul.f32 %v114_v8, %v38_v9 }
  0x7f   :  { %v44_v12 = vpack.c.bf16 %v41_v11, %v40_v10 }
  0x81   :  { %108 = vmatmul.msk.bf16.vlgmr.msra.gmra.mxu0 %vm61_vm0, %v44_v12 }
  0xfe   :  { %v74_v14 = vpop.f32.mrf.mxu0 }
  0xff   :  { %v92_v15 = vadd.f32 %v117_v13, %v74_v14 }
 0x101   :  { %94 = vst [vmem:[%s172_s4] sm:$0xff] %v92_v15 }
 0x106   :  { %v76_v16 = vpop.f32.mrf.mxu0 }
 0x107   :  { %v93_v17 = vadd.f32 %v117_v13, %v76_v16 }
 0x109   :  { %95 = vst [vmem:[%s172_s4 + $0x8] sm:$0xff] %v93_v17 }

// kernel: llm_forward.18
= control target key start
LH: loop header
LB: loop body
LE: loop exit
PB: predicated region body
PF: predicated region fallthrough
CT: control target
= control target key end

     0   :  { %s2668_s0 = inlined_call_operand.<no memory space> [shape: s32[1], index: 0, kind: input, shape index: {}, may-alias: {0,1}]   ;;  %s2669_s1 = inlined_call_operand.<no memory space> [shape: s32[1], index: 1, kind: input, shape index: {}, may-alias: {0,1}]   ;;  %s2670_s2 = inlined_call_operand.vmem [shape: bf16[2,8,3,4,8], index: 2, kind: input, shape index: {}, may-alias: {2,3,4}]   ;;  %s2671_s3 = inlined_call_operand.vmem [shape: bf16[2,8,3,4,8], index: 3, kind: input, shape index: {}, may-alias: {2,3,4}]   ;;  %s2672_s4 = inlined_call_operand.vmem [shape: bf16[2,8,3,4,8], index: 4, kind: input, shape index: {}, may-alias: {2,3,4}]   ;;  %s2673_s5 = inlined_call_operand.vmem [shape: bf16[2,8,32], index: 5, kind: output, shape index: {}]  }
   0x1   :  { %10 = sst [smem:[#allocation7]] %s2668_s0 }
   0x2   :  { %11 = sst [smem:[#allocation8]] %s2669_s1 }
   0x3   :  { %s2162_s22 = smov 0   ;;  %s2164_s23 = smov 0  }
   0x4   :  { %s2166_s24 = smov 0   ;;  %s2168_s25 = smov 0  }
   0x5   :  { %s2170_s26 = smov 0   ;;  %s2172_s27 = smov 0  }
   0x6   :  { %s2174_s28 = smov 0   ;;  %s2176_s29 = smov 0  }
   0x7   :  { %s2178_s0 = smov 0  }
   0x8 LB: > { %s29_s1 = sadd.s32 1, %s2109_s29  ;;  %p47_p1 = scmp.ne.s32.totalorder %s2101_s27, %s2097_s26  ;;  %s2113_s0 = sphi %s2178_s0, %s17_s0   ;;  %s2109_s29 = sphi %s2176_s29, %s2684_s29   ;;  %s2105_s28 = sphi %s2174_s28, %s2683_s28   ;;  %s2101_s27 = sphi %s2172_s27, %s2682_s27   ;;  %s2097_s26 = sphi %s2170_s26, %s2681_s26   ;;  %s2093_s25 = sphi %s2168_s25, %s2680_s25   ;;  %s2089_s24 = sphi %s2166_s24, %s2679_s24   ;;  %s2085_s23 = sphi %s2164_s23, %s2678_s23   ;;  %s2081_s22 = sphi %s2162_s22, %s2677_s22  }
   0x9   : > { %p31_p0 = scmp.ge.s32.totalorder %s29_s1, 2  ;;  %p48_p2 = scmp.eq.s32.totalorder %s2113_s0, 0 }
   0xa   : > { %p77_p4 = scmp.ne.s32.totalorder %s2093_s25, %s2089_s24  ;;  %s40_s7 = sadd.s32 1, %s2101_s27 }
   0xb   : > { %s2686_s1 = smov (%p31_p0, %s29_s1), 0  ;;  %p2213_p3 = por %p48_p2, %p47_p1 }
   0xc   : > { %s35_s6 = ssub.s32 %s2109_s29, %s2686_s1  ;;  %p2222_p6 = por %p77_p4, %p48_p2 }
   0xd   : > { %p38_p5 = scmp.eq.s32.totalorder %s35_s6, 0  ;;  %p107_p7 = scmp.ne.s32.totalorder %s2085_s23, %s2081_s22 }
   0xe   : > { %s70_s11 = sadd.s32 1, %s2093_s25  ;;  %s100_s12 = sadd.s32 1, %s2085_s23 }
   0xf   : > { %s2229_s9 = scalar_select %p38_p5, %s2101_s27, %s40_s7  }
  0x10   : > { %p2231_p8 = por %p107_p7, %p48_p2  ;;  %p1861_p9 = scmp.ge.s32.totalorder %s2113_s0, 2 }
  0x11   : > { %s2238_s13 = scalar_select %p38_p5, %s2093_s25, %s70_s11  }
  0x12   : > { %s2241_s14 = scalar_select %p38_p5, %s2085_s23, %s100_s12  }
  0x13   : > { %163 = sbr.rel (%p1861_p9) target bundleno = 84 (0x54), region = 16 }
  0x18   : > { %166 = sbr.rel (!%p2213_p3) target bundleno = 44 (0x2c), region = 20  ;;  %s171_s15 = sld [smem:[#allocation7]] (%p2213_p3) }
  0x19   : > { %s168_s16 = sand.u32 (%p2213_p3), 1, %s2101_s27   ;;  %s1913_s17 = smul.u32 (%p2213_p3), 24, %s2109_s29 }
  0x1a   : > { %s1862_s18 = sshll.u32 (%p2213_p3), %s168_s16, 4 }
  0x1b   : > { %s170_s12 = scalar_lea.vmem (%p2213_p3), [#allocation9], %s1862_s18 }
  0x1e   : > { %s1912_s19 = smul.u32 24, %s171_s15 }
  0x20   : > { %s175_s20 = sadd.s32 %s1913_s17, %s1912_s19 }
  0x21   : > { %s1865_s21 = sshll.u32 %s175_s20, 1 }
  0x22   : > { %s177_s11 = scalar_lea.vmem %s2670_s2, %s1865_s21 }
  0x23   : > { %v194_v0 = vld [vmem:[%s177_s11] sm:$0x3]  ;;  %v196_v1 = vld [vmem:[%s177_s11 + $0x6] sm:$0x3]  ;;  %v198_v2 = vld [vmem:[%s177_s11 + $0xc] sm:$0x3] }
  0x24   : > { %195 = vst [vmem:[%s170_s12] sm:$0x3] %v194_v0  ;;  %v200_v3 = vld [vmem:[%s177_s11 + $0x12] sm:$0x3]  ;;  %v202_v4 = vld [vmem:[%s177_s11 + $0x18] sm:$0x3] }
  0x25   : > { %197 = vst [vmem:[%s170_s12 + $0x2] sm:$0x3] %v196_v1  ;;  %v204_v5 = vld [vmem:[%s177_s11 + $0x1e] sm:$0x3]  ;;  %v206_v6 = vld [vmem:[%s177_s11 + $0x24] sm:$0x3] }
  0x26   : > { %199 = vst [vmem:[%s170_s12 + $0x4] sm:$0x3] %v198_v2  ;;  %v208_v7 = vld [vmem:[%s177_s11 + $0x2a] sm:$0x3] }
  0x27   : > { %201 = vst [vmem:[%s170_s12 + $0x6] sm:$0x3] %v200_v3 }
  0x28   : > { %203 = vst [vmem:[%s170_s12 + $0x8] sm:$0x3] %v202_v4 }
  0x29   : > { %205 = vst [vmem:[%s170_s12 + $0xa] sm:$0x3] %v204_v5 }
  0x2a   : > { %207 = vst [vmem:[%s170_s12 + $0xc] sm:$0x3] %v206_v6 }
  0x2b   : > { %209 = vst [vmem:[%s170_s12 + $0xe] sm:$0x3] %v208_v7 }
  0x2c PF: > { %249 = sbr.rel (!%p2222_p6) target bundleno = 64 (0x40), region = 61  ;;  %s254_s30 = sld [smem:[#allocation8]] (%p2222_p6) }
  0x2d   : > { %s251_s15 = sand.u32 (%p2222_p6), 1, %s2093_s25   ;;  %s1768_s16 = smul.u32 (%p2222_p6), 24, %s2109_s29 }
  0x2e   : > { %s1866_s17 = sshll.u32 (%p2222_p6), %s251_s15, 4 }
  0x2f   : > { %s253_s11 = scalar_lea.vmem (%p2222_p6), [#allocation10], %s1866_s17 }
  0x32   : > { %s1767_s18 = smul.u32 24, %s254_s30 }
  0x34   : > { %s1769_s19 = sadd.s32 %s1768_s16, %s1767_s18 }
  0x35   : > { %s1867_s20 = sshll.u32 %s1769_s19, 1 }
  0x36   : > { %s1771_s7 = scalar_lea.vmem %s2671_s3, %s1867_s20 }
  0x37   : > { %v1868_v8 = vld [vmem:[%s1771_s7 + $0x2] sm:$0x3]  ;;  %v1869_v9 = vld [vmem:[%s1771_s7 + $0x8] sm:$0x3]  ;;  %v1870_v10 = vld [vmem:[%s1771_s7 + $0xe] sm:$0x3] }
  0x38   : > { %279 = vst [vmem:[%s253_s11] sm:$0x3] %v1868_v8  ;;  %v1871_v11 = vld [vmem:[%s1771_s7 + $0x14] sm:$0x3]  ;;  %v1872_v12 = vld [vmem:[%s1771_s7 + $0x1a] sm:$0x3] }
  0x39   : > { %281 = vst [vmem:[%s253_s11 + $0x2] sm:$0x3] %v1869_v9  ;;  %v1873_v13 = vld [vmem:[%s1771_s7 + $0x20] sm:$0x3]  ;;  %v1874_v14 = vld [vmem:[%s1771_s7 + $0x26] sm:$0x3] }
  0x3a   : > { %283 = vst [vmem:[%s253_s11 + $0x4] sm:$0x3] %v1870_v10  ;;  %v1875_v15 = vld [vmem:[%s1771_s7 + $0x2c] sm:$0x3] }
  0x3b   : > { %285 = vst [vmem:[%s253_s11 + $0x6] sm:$0x3] %v1871_v11 }
  0x3c   : > { %287 = vst [vmem:[%s253_s11 + $0x8] sm:$0x3] %v1872_v12 }
  0x3d   : > { %289 = vst [vmem:[%s253_s11 + $0xa] sm:$0x3] %v1873_v13 }
  0x3e   : > { %291 = vst [vmem:[%s253_s11 + $0xc] sm:$0x3] %v1874_v14 }
  0x3f   : > { %293 = vst [vmem:[%s253_s11 + $0xe] sm:$0x3] %v1875_v15 }
  0x40 PF: > { %333 = sbr.rel (!%p2231_p8) target bundleno = 84 (0x54), region = 102  ;;  %s338_s8 = sld [smem:[#allocation8]] (%p2231_p8) }
  0x41   : > { %s335_s12 = sand.u32 (%p2231_p8), 1, %s2085_s23   ;;  %s1776_s30 = smul.u32 (%p2231_p8), 24, %s2109_s29 }
  0x42   : > { %s1876_s15 = sshll.u32 (%p2231_p8), %s335_s12, 4 }
  0x43   : > { %s337_s6 = scalar_lea.vmem (%p2231_p8), [#allocation11], %s1876_s15 }
  0x46   : > { %s1775_s16 = smul.u32 24, %s338_s8 }
  0x48   : > { %s1777_s17 = sadd.s32 %s1776_s30, %s1775_s16 }
  0x49   : > { %s1877_s18 = sshll.u32 %s1777_s17, 1 }
  0x4a   : > { %s1779_s21 = scalar_lea.vmem %s2672_s4, %s1877_s18 }
  0x4b   : > { %v1878_v16 = vld [vmem:[%s1779_s21 + $0x4] sm:$0x3]  ;;  %v1879_v17 = vld [vmem:[%s1779_s21 + $0xa] sm:$0x3]  ;;  %v1880_v18 = vld [vmem:[%s1779_s21 + $0x10] sm:$0x3] }
  0x4c   : > { %363 = vst [vmem:[%s337_s6] sm:$0x3] %v1878_v16  ;;  %v1881_v19 = vld [vmem:[%s1779_s21 + $0x16] sm:$0x3]  ;;  %v1882_v20 = vld [vmem:[%s1779_s21 + $0x1c] sm:$0x3] }
  0x4d   : > { %365 = vst [vmem:[%s337_s6 + $0x2] sm:$0x3] %v1879_v17  ;;  %v1883_v21 = vld [vmem:[%s1779_s21 + $0x22] sm:$0x3]  ;;  %v1884_v22 = vld [vmem:[%s1779_s21 + $0x28] sm:$0x3] }
  0x4e   : > { %367 = vst [vmem:[%s337_s6 + $0x4] sm:$0x3] %v1880_v18  ;;  %v1885_v23 = vld [vmem:[%s1779_s21 + $0x2e] sm:$0x3] }
  0x4f   : > { %369 = vst [vmem:[%s337_s6 + $0x6] sm:$0x3] %v1881_v19 }
  0x50   : > { %371 = vst [vmem:[%s337_s6 + $0x8] sm:$0x3] %v1882_v20 }
  0x51   : > { %373 = vst [vmem:[%s337_s6 + $0xa] sm:$0x3] %v1883_v21 }
  0x52   : > { %375 = vst [vmem:[%s337_s6 + $0xc] sm:$0x3] %v1884_v22 }
  0x53   : > { %377 = vst [vmem:[%s337_s6 + $0xe] sm:$0x3] %v1885_v23 }
  0x54 PF: > { %p1886_p10 = scmp.ge.s32.totalorder %s2113_s0, 1  ;;  %p416_p11 = scmp.lt.s32.totalorder %s2113_s0, 3 }
  0x56   : > { %p417_p12 = pnand %p1886_p10, %p416_p11 }
  0x57   : > { %s423_s10 = sand.u32 (!%p417_p12), 1, %s2097_s26   ;;  %s430_s7 = sand.u32 (!%p417_p12), 1, %s2089_s24  }
  0x58   : > { %420 = sbr.rel (%p417_p12) target bundleno = 1507 (0x5e3), region = 143  ;;  %s1887_s11 = sshll.u32 (!%p417_p12), %s423_s10, 4 }
  0x59   : > { %s1888_s8 = sshll.u32 (!%p417_p12), %s430_s7, 4  ;;  %s437_s12 = sand.u32 (!%p417_p12), 1, %s2081_s22  }
  0x5a   : > { %s2270_s30 = sld [smem:[#allocation7]] (!%p417_p12)  ;;  %s1889_s15 = sshll.u32 (!%p417_p12), %s437_s12, 4 }
  0x5b   : > { %p478_p13 = scmp.lt.s32.totalorder (!%p417_p12), %s2105_s28, 1  ;;  %s2273_s16 = sld [smem:[#allocation8]] (!%p417_p12) }
  0x5c   : > { %s425_s22 = scalar_lea.vmem (!%p417_p12), [#allocation9], %s1887_s11  ;;  %s2284_s21 = scalar_lea.vmem (!%p417_p12), [#allocation10], %s1888_s8 }
  0x5d   : > { %s2688_s28 = smov (!%p478_p13, %s2105_s28), 1  ;;  %s2286_s6 = scalar_lea.vmem [#allocation11], %s1889_s15 }
  0x60   : > { %p480_p0 = scmp.lt.s32.totalorder %s2270_s30, 0 }
  0x61   : > { %p1891_p1 = scmp.ne.s32.totalorder %s2273_s16, 0 }
  0x62   : > { %s481_s17 = scalar_select %p480_p0, %s2270_s30, 0 }
  0x63   : > { %492 = sbr.rel (%p1891_p1) target bundleno = 132 (0x84), region = 159 }
  0x64   : > { %s482_s18 = sadd.s32 %s481_s17, %s2688_s28 }
  0x65   : > { %s2278_s19 = sshll.u32 %s482_s18, 2 }
  0x66   : > { %s484_s20 = scalar_lea.vmem %s2673_s5, %s2278_s19 }
  0x68   : > { %v507_v24 = vld [vmem:[%s425_s22] sm:$0x3]  ;;  %v508_v25 = vld [vmem:[%s425_s22 + $0x2] sm:$0x3]  ;;  %v509_v26 = vld [vmem:[%s425_s22 + $0x4] sm:$0x3] }
  0x69   : > { %v510_v27 = vld [vmem:[%s425_s22 + $0x6] sm:$0x3]  ;;  %v515_v28 = vrot.slane %v509_v26, 4  ;;  %vm516_vm0 = vcmask 1047556   ;;  %v2115_v29 = vmov 1934713408  }
  0x6a   : > { %v519_v30 = vunpack.c.l.s4 %v2115_v29  ;;  %v524_v31 = vrot.slane %v510_v27, 4  ;;  %v511_v32 = vld [vmem:[%s425_s22 + $0x8] sm:$0x3]  ;;  %v512_v33 = vld [vmem:[%s425_s22 + $0xa] sm:$0x3]  ;;  %vm493_vm1 = vcmask 7168  }
  0x6b   : > { %v517_v34 = vsel %vm516_vm0, %v515_v28, %v507_v24  ;;  %v513_v35 = vld [vmem:[%s425_s22 + $0xc] sm:$0x3]  ;;  %v514_v36 = vld [vmem:[%s425_s22 + $0xe] sm:$0x3]  ;;  %v2116_v41 = vmov -1e+30  }
  0x6c   : > { %v520_v37 = vunpack.c.0.s8 %v519_v30  ;;  %v525_v38 = vsel %vm516_vm0, %v524_v31, %v508_v25  ;;  %v532_v39 = vrot.slane %v513_v35, 4  ;;  %v540_v40 = vrot.slane %v514_v36, 4  ;;  %494 = vst.msk [vmem:[#allocation2] sm:$0xff] %vm493_vm1, %v2116_v41 }
  0x6d   : > { %495 = vst.msk [vmem:[#allocation2 + $0x8] sm:$0xff] %vm493_vm1, %v2116_v41  ;;  %v2117_v52 = vmov 0.0   ;;  %vm502_vm2 = vcmask 64512   ;;  %vm603_vm3 = vcmask 60416  }
  0x6e   : > { %v521_v42 = vperm.slane %v517_v34, %v520_v37  ;;  %v529_v43 = vperm.slane %v525_v38, %v520_v37  ;;  %v533_v44 = vsel %vm516_vm0, %v532_v39, %v511_v32  ;;  %v541_v45 = vsel %vm516_vm0, %v540_v40, %v512_v33  ;;  %496 = vst.msk [vmem:[#allocation2 + $0x10] sm:$0xff] %vm493_vm1, %v2116_v41 }
  0x6f   : > { %v537_v46 = vperm.slane %v533_v44, %v520_v37  ;;  %v545_v47 = vperm.slane %v541_v45, %v520_v37  ;;  %497 = vst.msk [vmem:[#allocation2 + $0x18] sm:$0xff] %vm493_vm1, %v2116_v41 }
  0x70   : > { %v550_v48 = vpack.i.b16 %v529_v43, %v521_v42  ;;  %v551_v49 = vshrl.u32 %v521_v42, 16  ;;  %v552_v50 = vshrl.u32 %v529_v43, 16  ;;  %v522_v51 = vrot.slane %v521_v42, 4  ;;  %498 = vst.msk [vmem:[#allocation3] sm:$0xff] %vm493_vm1, %v2117_v52 }
  0x71   : > { %v562_v53 = vpack.i.b16 %v545_v47, %v537_v46  ;;  %v563_v54 = vshrl.u32 %v537_v46, 16  ;;  %v564_v55 = vshrl.u32 %v545_v47, 16  ;;  %v530_v56 = vrot.slane %v529_v43, 4  ;;  %499 = vst.msk [vmem:[#allocation3 + $0x8] sm:$0xff] %vm493_vm1, %v2117_v52 }
  0x72   : > { %573 = vst [vmem:[#allocation1] ss:$2 sm:$0xff] %v550_v48  ;;  %v553_v57 = vpack.i.b16 %v552_v50, %v551_v49  ;;  %v523_v58 = vsel %vm516_vm0, 0, %v522_v51  ;;  %v538_v59 = vrot.slane %v537_v46, 4  ;;  %v546_v60 = vrot.slane %v545_v47, 4 }
  0x73   : > { %576 = vst [vmem:[#allocation1 + $0x1] ss:$2 sm:$0xff] %v562_v53  ;;  %v565_v61 = vpack.i.b16 %v564_v55, %v563_v54  ;;  %v531_v62 = vsel %vm516_vm0, 0, %v530_v56  ;;  %v557_v63 = vshrl.u32 %v523_v58, 16 }
  0x74   : > { %580 = vst [vmem:[#allocation1 + $0x10] ss:$2 sm:$0xff] %v553_v57  ;;  %v556_v0 = vpack.i.b16 %v531_v62, %v523_v58  ;;  %v539_v1 = vsel %vm516_vm0, 0, %v538_v59  ;;  %v547_v2 = vsel %vm516_vm0, 0, %v546_v60  ;;  %v558_v3 = vshrl.u32 %v531_v62, 16 }
  0x75   : > { %583 = vst [vmem:[#allocation1 + $0x11] ss:$2 sm:$0xff] %v565_v61  ;;  %v568_v4 = vpack.i.b16 %v547_v2, %v539_v1  ;;  %v569_v5 = vshrl.u32 %v539_v1, 16  ;;  %v570_v6 = vshrl.u32 %v547_v2, 16 }
  0x76   : > { %587 = vst [vmem:[#allocation1 + $0x20] ss:$2 sm:$0xff] %v556_v0  ;;  %v559_v7 = vpack.i.b16 %v558_v3, %v557_v63 }
  0x77   : > { %590 = vst [vmem:[#allocation1 + $0x21] ss:$2 sm:$0xff] %v568_v4  ;;  %v571_v8 = vpack.i.b16 %v570_v6, %v569_v5 }
  0x78   : > { %594 = vst [vmem:[#allocation1 + $0x30] ss:$2 sm:$0xff] %v559_v7 }
  0x79   : > { %597 = vst [vmem:[#allocation1 + $0x31] ss:$2 sm:$0xff] %v571_v8 }
  0x7a   : > { %500 = vst.msk [vmem:[#allocation3 + $0x10] sm:$0xff] %vm493_vm1, %v2117_v52  ;;  %v577_v9 = vld.sshfl [vmem:[#allocation1] sm:$0xff pattern:$0x75643120] }
  0x7b   : > { %501 = vst.msk [vmem:[#allocation3 + $0x18] sm:$0xff] %vm493_vm1, %v2117_v52 }
  0x7c   : > { %503 = vst.msk [vmem:[#allocation4] sm:$0xff] %vm502_vm2, %v2117_v52  ;;  %v584_v10 = vld.sshfl [vmem:[#allocation1 + $0x10] sm:$0xff pattern:$0x75643120] }
  0x7d   : > { %504 = vst.msk [vmem:[#allocation4 + $0x8] sm:$0xff] %vm502_vm2, %v2117_v52 }
  0x7e   : > { %505 = vst.msk [vmem:[#allocation4 + $0x10] sm:$0xff] %vm502_vm2, %v2117_v52  ;;  %v591_v11 = vld.sshfl [vmem:[#allocation1 + $0x20] sm:$0xff pattern:$0x75643120] }
  0x7f   : > { %506 = vst.msk [vmem:[#allocation4 + $0x18] sm:$0xff] %vm502_vm2, %v2117_v52 }
  0x80   : > { %604 = vst.msk [vmem:[#allocation5] sm:$0xf] %vm603_vm3, %v577_v9  ;;  %v598_v12 = vld.sshfl [vmem:[#allocation1 + $0x30] sm:$0xff pattern:$0x75643120] }
  0x81   : > { %605 = vst.msk [vmem:[#allocation5 + $0x4] sm:$0xf] %vm603_vm3, %v584_v10 }
  0x82   : > { %606 = vst.msk [vmem:[#allocation5 + $0x8] sm:$0xf] %vm603_vm3, %v591_v11 }
  0x83   : > { %607 = vst.msk [vmem:[#allocation5 + $0xc] sm:$0xf] %vm603_vm3, %v598_v12 }
  0x84 PF: > { %p1892_p2 = scmp.ge.s32.totalorder %s2273_s16, %s2270_s30 }
  0x86   : > { %611 = sbr.rel (%p1892_p2) target bundleno = 692 (0x2b4), region = 163 }
  0x8b   : > { %v612_v13 = vld [vmem:[%s2284_s21] sm:$0x3]  ;;  %v613_v14 = vld [vmem:[%s2284_s21 + $0x2] sm:$0x3]  ;;  %v614_v15 = vld [vmem:[%s2284_s21 + $0x4] sm:$0x3] }
  0x8c   : > { %v615_v16 = vld [vmem:[%s2284_s21 + $0x6] sm:$0x3]  ;;  %v616_v17 = vld [vmem:[%s2284_s21 + $0x8] sm:$0x3]  ;;  %v617_v18 = vld [vmem:[%s2284_s21 + $0xa] sm:$0x3] }
  0x8d   : > { %v618_v19 = vld [vmem:[%s2284_s21 + $0xc] sm:$0x3]  ;;  %v619_v20 = vld [vmem:[%s2284_s21 + $0xe] sm:$0x3]  ;;  %v620_v21 = vrot.slane %v614_v15, 4  ;;  %vm621_vm4 = vcmask 1047556  }
  0x8e   : > { %v629_v22 = vrot.slane %v615_v16, 4  ;;  %v637_v23 = vrot.slane %v618_v19, 4  ;;  %v645_v24 = vrot.slane %v619_v20, 4  ;;  %v2118_v25 = vmov 1934713408  }
  0x8f   : > { %v624_v26 = vunpack.c.l.s4 %v2118_v25  ;;  %v622_v27 = vsel %vm621_vm4, %v620_v21, %v612_v13  ;;  %vm751_vm5 = vcmask 64512   ;;  %v741_v54 = vld [vmem:[#allocation5] sm:$0xf]  ;;  %v679_v59 = vld [vmem:[%s2286_s6 + $0x4] sm:$0x3]  ;;  %vm934_vm6 = vcmask 7168  }
  0x90   : > { %v630_v28 = vsel %vm621_vm4, %v629_v22, %v613_v14  ;;  %v638_v29 = vsel %vm621_vm4, %v637_v23, %v616_v17  ;;  %v646_v30 = vsel %vm621_vm4, %v645_v24, %v617_v18  ;;  %v680_v62 = vld [vmem:[%s2286_s6 + $0x6] sm:$0x3]  ;;  %v683_v63 = vld [vmem:[%s2286_s6 + $0xc] sm:$0x3]  ;;  %v684_v0 = vld [vmem:[%s2286_s6 + $0xe] sm:$0x3] }
  0x91   : > { %v2319_v31 = vunpack.c.0.s8 %v624_v26  ;;  %v685_v3 = vrot.slane %v679_v59, 4  ;;  %v693_v4 = vrot.slane %v680_v62, 4  ;;  %v677_v5 = vld [vmem:[%s2286_s6] sm:$0x3]  ;;  %v678_v6 = vld [vmem:[%s2286_s6 + $0x2] sm:$0x3] }
  0x92   : > { %v701_v7 = vrot.slane %v683_v63, 4  ;;  %v709_v8 = vrot.slane %v684_v0, 4  ;;  %v742_v9 = vld [vmem:[#allocation5 + $0x4] sm:$0xf]  ;;  %v681_v11 = vld [vmem:[%s2286_s6 + $0x8] sm:$0x3] }
  0x93   : > { %v626_v32 = vperm.slane %v622_v27, %v2319_v31  ;;  %v634_v33 = vperm.slane %v630_v28, %v2319_v31  ;;  %v642_v34 = vperm.slane %v638_v29, %v2319_v31  ;;  %v650_v35 = vperm.slane %v646_v30, %v2319_v31  ;;  %v682_v12 = vld [vmem:[%s2286_s6 + $0xa] sm:$0x3] }
  0x94   : > { %v686_v14 = vsel %vm621_vm4, %v685_v3, %v677_v5  ;;  %v694_v15 = vsel %vm621_vm4, %v693_v4, %v678_v6  ;;  %v702_v17 = vsel %vm621_vm4, %v701_v7, %v681_v11  ;;  %v710_v18 = vsel %vm621_vm4, %v709_v8, %v682_v12  ;;  %v743_v24 = vld [vmem:[#allocation5 + $0x8] sm:$0xf]  ;;  %v849_v7 = vld [vmem:[#allocation2 + $0x18] sm:$0xff] }
  0x95   : > { %v655_v36 = vpack.i.b16 %v634_v33, %v626_v32  ;;  %v667_v37 = vpack.i.b16 %v650_v35, %v642_v34  ;;  %v656_v38 = vshrl.u32 %v626_v32, 16  ;;  %v657_v39 = vshrl.u32 %v634_v33, 16  ;;  %v847_v59 = vld [vmem:[#allocation2 + $0x8] sm:$0xff] }
  0x96   : > { %v668_v40 = vshrl.u32 %v642_v34, 16  ;;  %v669_v41 = vshrl.u32 %v650_v35, 16  ;;  %v627_v44 = vrot.slane %v626_v32, 4  ;;  %v635_v45 = vrot.slane %v634_v33, 4 }
  0x97   : > { %746 = vst [vmem:[#allocation1] ss:$4 sm:$0xff] %v655_v36  ;;  %v658_v42 = vpack.i.b16 %v657_v39, %v656_v38  ;;  %v643_v47 = vrot.slane %v642_v34, 4  ;;  %v651_v48 = vrot.slane %v650_v35, 4  ;;  %v2347_v20 = vperm.slane %v686_v14, %v2319_v31  ;;  %v744_v34 = vld [vmem:[#allocation5 + $0xc] sm:$0xf] }
  0x98   : > { %749 = vst [vmem:[#allocation1 + $0x1] ss:$4 sm:$0xff] %v667_v37  ;;  %v670_v43 = vpack.i.b16 %v669_v41, %v668_v40  ;;  %v628_v50 = vsel %vm621_vm4, 0, %v627_v44  ;;  %v636_v51 = vsel %vm621_vm4, 0, %v635_v45  ;;  %v2350_v21 = vperm.slane %v694_v15, %v2319_v31 }
  0x99   : > { %v644_v52 = vsel %vm621_vm4, 0, %v643_v47  ;;  %v652_v53 = vsel %vm621_vm4, 0, %v651_v48  ;;  %v661_v55 = vpack.i.b16 %v636_v51, %v628_v50  ;;  %v662_v58 = vshrl.u32 %v628_v50, 16 }
  0x9a   : > { %v673_v56 = vpack.i.b16 %v652_v53, %v644_v52  ;;  %v663_v61 = vshrl.u32 %v636_v51, 16  ;;  %v674_v1 = vshrl.u32 %v644_v52, 16  ;;  %v675_v2 = vshrl.u32 %v652_v53, 16 }
  0x9b   : > { %v2353_v22 = vperm.slane %v702_v17, %v2319_v31  ;;  %v2356_v23 = vperm.slane %v710_v18, %v2319_v31  ;;  %v719_v25 = vpack.i.b16 %v2350_v21, %v2347_v20  ;;  %v720_v29 = vshrl.u32 %v2347_v20, 16 }
  0x9c   : > { %v664_v10 = vpack.i.b16 %v663_v61, %v662_v58  ;;  %v676_v13 = vpack.i.b16 %v675_v2, %v674_v1  ;;  %v721_v30 = vshrl.u32 %v2350_v21, 16  ;;  %v2119_v53 = vmov 0   ;;  %v848_v1 = vld [vmem:[#allocation2 + $0x10] sm:$0xff] }
  0x9d   : > { %v731_v26 = vpack.i.b16 %v2356_v23, %v2353_v22  ;;  %v732_v31 = vshrl.u32 %v2353_v22, 16  ;;  %v733_v32 = vshrl.u32 %v2356_v23, 16  ;;  %1998 = vset.pattern.permute.xlu0 %v2119_v53  ;;  %1999 = vset.pattern.permute.xlu1 %v2119_v53  ;;  %v691_v14 = vrot.slane %v2347_v20, 4 }
  0x9e   : > { %v722_v33 = vpack.i.b16 %v721_v30, %v720_v29  ;;  %1997 = vset.pattern.permute.xlu2 %v2119_v53  ;;  %v699_v15 = vrot.slane %v2350_v21, 4  ;;  %v715_v17 = vrot.slane %v2356_v23, 4  ;;  %vm952_vm7 = vcmask 1043456  }
  0x9f   : > { %v750_v46 = vld.sshfl [vmem:[#allocation1] sm:$0xff pattern:$0x73625140]  ;;  %v734_v35 = vpack.i.b16 %v733_v32, %v732_v31  ;;  %v692_v18 = vsel %vm621_vm4, 0, %v691_v14  ;;  %v911_v14 = vld [vmem:[#allocation3 + $0x8] sm:$0xff] }
  0xa0   : > { %v755_v49 = vsel %vm751_vm5, %v750_v46, 0  ;;  %771 = vst [vmem:[#allocation1] ss:$4 sm:$0xff] %v658_v42  ;;  %v726_v20 = vshrl.u32 %v692_v18, 16 }
  0xa1   : > { %764 = vmatpush.bf16.xpose.msra.mxu0 %v755_v49  ;;  %774 = vst [vmem:[#allocation1 + $0x1] ss:$4 sm:$0xff] %v670_v43 }
  0xa8   : > { %1893 = vmatmul.msk.bf16.vlgmr.msra.gmra.mxu0 %vm751_vm5, %v741_v54  ;;  %v775_v57 = vld.sshfl [vmem:[#allocation1] sm:$0xff pattern:$0x73625140]  ;;  %v846_v54 = vld [vmem:[#allocation2] sm:$0xff] }
  0xa9   : > { %v779_v60 = vsel %vm751_vm5, %v775_v57, 0  ;;  %795 = vst [vmem:[#allocation1] ss:$4 sm:$0xff] %v661_v55 }
  0xaa   : > { %788 = vmatpush.bf16.xpose.msra.mxu1 %v779_v60  ;;  %798 = vst [vmem:[#allocation1 + $0x1] ss:$4 sm:$0xff] %v673_v56 }
  0xb1   : > { %1894 = vmatmul.msk.bf16.vlgmr.msra.gmra.mxu1 %vm751_vm5, %v742_v9  ;;  %v799_v16 = vld.sshfl [vmem:[#allocation1] sm:$0xff pattern:$0x73625140] }
  0xb2   : > { %v803_v19 = vsel %vm751_vm5, %v799_v16, 0  ;;  %819 = vst [vmem:[#allocation1] ss:$4 sm:$0xff] %v664_v10  ;;  %v707_v16 = vrot.slane %v2353_v22, 4 }
  0xb3   : > { %812 = vmatpush.bf16.xpose.msra.mxu2 %v803_v19  ;;  %822 = vst [vmem:[#allocation1 + $0x1] ss:$4 sm:$0xff] %v676_v13  ;;  %v700_v19 = vsel %vm621_vm4, 0, %v699_v15  ;;  %v1040_v15 = vld [vmem:[#allocation4] sm:$0xff] }
  0xb4   : > { %v727_v29 = vshrl.u32 %v700_v19, 16 }
  0xb6   : > { %v728_v22 = vpack.i.b16 %v727_v29, %v726_v20  ;;  %v1041_v20 = vld [vmem:[#allocation4 + $0x8] sm:$0xff] }
  0xba   : > { %1895 = vmatmul.msk.bf16.vlgmr.msra.gmra.mxu2 %vm751_vm5, %v743_v24  ;;  %v823_v27 = vld.sshfl [vmem:[#allocation1] sm:$0xff pattern:$0x73625140]  ;;  %v708_v24 = vsel %vm621_vm4, 0, %v707_v16 }
  0xbb   : > { %v827_v28 = vsel %vm751_vm5, %v823_v27, 0  ;;  %944 = vst [vmem:[#allocation1] ss:$4 sm:$0xff] %v719_v25  ;;  %v716_v25 = vsel %vm621_vm4, 0, %v715_v17  ;;  %v738_v21 = vshrl.u32 %v708_v24, 16 }
  0xbc   : > { %836 = vmatpush.bf16.xpose.msra.mxu3 %v827_v28  ;;  %947 = vst [vmem:[#allocation1 + $0x1] ss:$4 sm:$0xff] %v731_v26  ;;  %v725_v26 = vpack.i.b16 %v700_v19, %v692_v18  ;;  %v737_v27 = vpack.i.b16 %v716_v25, %v708_v24  ;;  %v739_v30 = vshrl.u32 %v716_v25, 16 }
  0xbe   : > { %v740_v31 = vpack.i.b16 %v739_v30, %v738_v21 }
  0xc3   : > { %v2368_v36 = vld.sshfl [vmem:[#allocation1] sm:$0xff pattern:$0x73625140]  ;;  %1896 = vmatmul.msk.bf16.vlgmr.msra.gmra.mxu3 %vm751_vm5, %v744_v34 }
  0xc4   : > { %969 = vst [vmem:[#allocation1] ss:$4 sm:$0xff] %v722_v33  ;;  %v953_v33 = vsel %vm952_vm7, %v2368_v36, 0 }
  0xc5   : > { %972 = vst [vmem:[#allocation1 + $0x1] ss:$4 sm:$0xff] %v734_v35  ;;  %962 = vmatpush.bf16.msrb.mxu0 %v953_v33 }
  0xcc   : > { %v973_v28 = vld.sshfl [vmem:[#allocation1] sm:$0xff pattern:$0x73625140] }
  0xcd   : > { %993 = vst [vmem:[#allocation1] ss:$4 sm:$0xff] %v725_v26  ;;  %v977_v34 = vsel %vm952_vm7, %v973_v28, 0  ;;  %v1042_v26 = vld [vmem:[#allocation4 + $0x10] sm:$0xff] }
  0xce   : > { %996 = vst [vmem:[#allocation1 + $0x1] ss:$4 sm:$0xff] %v737_v27  ;;  %986 = vmatpush.bf16.msrb.mxu1 %v977_v34 }
  0xd5   : > { %v997_v23 = vld.sshfl [vmem:[#allocation1] sm:$0xff pattern:$0x73625140] }
  0xd6   : > { %v1001_v32 = vsel %vm952_vm7, %v997_v23, 0  ;;  %1017 = vst [vmem:[#allocation1] ss:$4 sm:$0xff] %v728_v22  ;;  %v1043_v22 = vld [vmem:[#allocation4 + $0x18] sm:$0xff] }
  0xd7   : > { %1010 = vmatpush.bf16.msrb.mxu2 %v1001_v32  ;;  %1020 = vst [vmem:[#allocation1 + $0x1] ss:$4 sm:$0xff] %v740_v31 }
  0xde   : > { %v1021_v35 = vld.sshfl [vmem:[#allocation1] sm:$0xff pattern:$0x73625140] }
 0x125   : > { %v766_v37 = vpop.f32.mrf.mxu0 }
 0x126   : > { %v2371_v38 = vmul.f32 0.35355338, %v766_v37  ;;  %v1025_v37 = vsel %vm952_vm7, %v1021_v35, 0 }
 0x127   : > { %1034 = vmatpush.bf16.msrb.mxu3 %v1025_v37 }
 0x128   : > { %v850_v39 = vsel %vm751_vm5, %v2371_v38, -inf }
 0x129   : > { %851 = vmax.xlane.f32.xlu1 %v850_v39 }
 0x12d   : > { %v768_v40 = vpop.f32.mrf.mxu0 }
 0x12e   : > { %v790_v41 = vpop.f32.mrf.mxu1 }
 0x12f   : > { %v2375_v42 = vmul.f32 0.35355338, %v790_v41 }
 0x131   : > { %v853_v43 = vsel %vm751_vm5, %v2375_v42, -inf }
 0x132   : > { %854 = vmax.xlane.f32.xlu1 %v853_v43 }
 0x136   : > { %v792_v44 = vpop.f32.mrf.mxu1 }
 0x13d   : > { %v814_v45 = vpop.f32.mrf.mxu2 }
 0x13e   : > { %v2379_v46 = vmul.f32 0.35355338, %v814_v45 }
 0x140   : > { %v856_v47 = vsel %vm751_vm5, %v2379_v46, -inf }
 0x141   : > { %857 = vmax.xlane.f32.xlu0 %v856_v47 }
 0x145   : > { %v816_v48 = vpop.f32.mrf.mxu2 }
 0x146   : > { %v838_v49 = vpop.f32.mrf.mxu3 }
 0x147   : > { %v2383_v50 = vmul.f32 0.35355338, %v838_v49 }
 0x149   : > { %v859_v51 = vsel %vm751_vm5, %v2383_v50, -inf }
 0x14a   : > { %860 = vmax.xlane.f32.xlu0 %v859_v51 }
 0x14e   : > { %v840_v52 = vpop.f32.mrf.mxu3 }
 0x19c   : > { %v852_v55 = vpop.xlane.xlu1 %851 }
 0x19d   : > { %v862_v56 = vmax.f32 %v846_v54, %v852_v55 }
 0x19f   : > { %v866_v57 = vsub.f32 %v846_v54, %v862_v56  ;;  %1076 = vst.msk [vmem:[#allocation2] sm:$0xff] %vm934_vm6, %v862_v56  ;;  %880 = vperm.xlu0 %1998, %v862_v56  }
 0x1a1   : > { %v870_v58 = vmul.f32 1.442695, %v866_v57 }
 0x1a3   : > { %2000 = vpow2.f32 %v870_v58 }
 0x1a5   : > { %v855_v60 = vpop.xlane.xlu1 %854 }
 0x1a6   : > { %v863_v61 = vmax.f32 %v847_v59, %v855_v60 }
 0x1a8   : > { %v867_v62 = vsub.f32 %v847_v59, %v863_v61  ;;  %1077 = vst.msk [vmem:[#allocation2 + $0x8] sm:$0xff] %vm934_vm6, %v863_v61  ;;  %885 = vperm.xlu1 %1999, %v863_v61  }
 0x1a9   : > { %v2389_v0 = vpop.eup %2000 }
 0x1aa   : > { %v872_v63 = vmul.f32 1.442695, %v867_v62 }
 0x1ac   : > { %2002 = vpow2.f32 %v872_v63 }
 0x1b0   : > { %1046 = vperm.xlu1 %1999, %v2389_v0  }
 0x1b2   : > { %v2392_v3 = vpop.eup %2002 }
 0x1b3   : > { %v915_v18 = vmul.f32 %v2392_v3, %v911_v14 }
 0x1b4   : > { %v858_v2 = vpop.xlane.xlu0 %857 }
 0x1b5   : > { %v864_v4 = vmax.f32 %v848_v1, %v858_v2  ;;  %v910_v2 = vld [vmem:[#allocation3] sm:$0xff] }
 0x1b7   : > { %v868_v5 = vsub.f32 %v848_v1, %v864_v4  ;;  %1078 = vst.msk [vmem:[#allocation2 + $0x10] sm:$0xff] %vm934_vm6, %v864_v4  ;;  %890 = vperm.xlu2 %1997, %v864_v4   ;;  %v912_v1 = vld [vmem:[#allocation3 + $0x10] sm:$0xff] }
 0x1b8   : > { %1051 = vperm.xlu1 %1999, %v2392_v3  }
 0x1b9   : > { %v874_v6 = vmul.f32 1.442695, %v868_v5 }
 0x1bb   : > { %2004 = vpow2.f32 %v874_v6  ;;  %v914_v6 = vmul.f32 %v2389_v0, %v910_v2 }
 0x1bd   : > { %v861_v8 = vpop.xlane.xlu0 %860 }
 0x1be   : > { %v865_v9 = vmax.f32 %v849_v7, %v861_v8 }
 0x1c0   : > { %v869_v10 = vsub.f32 %v849_v7, %v865_v9  ;;  %1079 = vst.msk [vmem:[#allocation2 + $0x18] sm:$0xff] %vm934_vm6, %v865_v9  ;;  %895 = vperm.xlu2 %1997, %v865_v9  }
 0x1c1   : > { %v2397_v11 = vpop.eup %2004 }
 0x1c2   : > { %v876_v12 = vmul.f32 1.442695, %v869_v10  ;;  %1056 = vperm.xlu0 %1998, %v2397_v11   ;;  %v916_v4 = vmul.f32 %v2397_v11, %v912_v1 }
 0x1c4   : > { %2006 = vpow2.f32 %v876_v12  ;;  %v913_v12 = vld [vmem:[#allocation3 + $0x18] sm:$0xff] }
 0x1ca   : > { %v2400_v13 = vpop.eup %2006 }
 0x1cb   : > { %1061 = vperm.xlu1 %1999, %v2400_v13   ;;  %v917_v16 = vmul.f32 %v2400_v13, %v913_v12 }
 0x211   : > { %v891_v39 = vpop.permute.xlu2 %890  ;;  %v881_v40 = vpop.permute.xlu0 %880 }
 0x212   : > { %v900_v41 = vsub.f32 %v2379_v46, %v891_v39  ;;  %v898_v43 = vsub.f32 %v2371_v38, %v881_v40 }
 0x214   : > { %v906_v44 = vmul.f32 1.442695, %v900_v41  ;;  %v902_v45 = vmul.f32 1.442695, %v898_v43 }
 0x216   : > { %2008 = vpow2.f32 %v906_v44 }
 0x217   : > { %2010 = vpow2.f32 %v902_v45 }
 0x21a   : > { %v896_v47 = vpop.permute.xlu2 %895  ;;  %v886_v48 = vpop.permute.xlu1 %885 }
 0x21b   : > { %v901_v36 = vsub.f32 %v2383_v50, %v896_v47  ;;  %v899_v49 = vsub.f32 %v2375_v42, %v886_v48 }
 0x21c   : > { %v2009_v51 = vpop.eup %2008 }
 0x21d   : > { %v2011_v52 = vpop.eup %2010  ;;  %v908_v53 = vmul.f32 1.442695, %v901_v36  ;;  %v904_v54 = vmul.f32 1.442695, %v899_v49  ;;  %v924_v55 = vsel %vm751_vm5, %v2009_v51, 0.0  ;;  %v941_v56 = vpack.c.bf16 %v2009_v51, %v2009_v51 }
 0x21e   : > { %925 = vadd.xlane.f32.xlu0 %v924_v55  ;;  %v918_v38 = vsel %vm751_vm5, %v2011_v52, 0.0  ;;  %v939_v46 = vpack.c.bf16 %v2011_v52, %v2011_v52 }
 0x21f   : > { %2012 = vpow2.f32 %v908_v53  ;;  %1899 = vmatmul.msk.bf16.vlgmr.msrb.gmra.mxu2 %vm751_vm5, %v941_v56  ;;  %919 = vadd.xlane.f32.xlu2 %v918_v38 }
 0x220   : > { %2014 = vpow2.f32 %v904_v54  ;;  %1897 = vmatmul.msk.bf16.vlgmr.msrb.gmra.mxu0 %vm751_vm5, %v939_v46 }
 0x222   : > { %v1047_v61 = vpop.permute.xlu1 %1046 }
 0x223   : > { %v1064_v24 = vmul.f32 %v1047_v61, %v1040_v15 }
 0x225   : > { %v2013_v50 = vpop.eup %2012 }
 0x226   : > { %v2015_v42 = vpop.eup %2014  ;;  %v927_v57 = vsel %vm751_vm5, %v2013_v50, 0.0  ;;  %v942_v58 = vpack.c.bf16 %v2013_v50, %v2013_v50 }
 0x227   : > { %928 = vadd.xlane.f32.xlu1 %v927_v57  ;;  %v921_v59 = vsel %vm751_vm5, %v2015_v42, 0.0  ;;  %v940_v60 = vpack.c.bf16 %v2015_v42, %v2015_v42 }
 0x228   : > { %1900 = vmatmul.msk.bf16.vlgmr.msrb.gmra.mxu3 %vm751_vm5, %v942_v58  ;;  %922 = vadd.xlane.f32.xlu2 %v921_v59 }
 0x229   : > { %1898 = vmatmul.msk.bf16.vlgmr.msrb.gmra.mxu1 %vm751_vm5, %v940_v60 }
 0x22a   : > { %v1052_v63 = vpop.permute.xlu1 %1051 }
 0x22b   : > { %v1065_v21 = vmul.f32 %v1052_v63, %v1041_v20 }
 0x234   : > { %v1057_v62 = vpop.permute.xlu0 %1056 }
 0x235   : > { %v1066_v28 = vmul.f32 %v1057_v62, %v1042_v26 }
 0x23d   : > { %v1062_v7 = vpop.permute.xlu1 %1061 }
 0x23e   : > { %v1067_v23 = vmul.f32 %v1062_v7, %v1043_v22 }
 0x291   : > { %v926_v5 = vpop.xlane.xlu0 %925 }
 0x292   : > { %v932_v8 = vadd.f32 %v926_v5, %v916_v4  ;;  %v920_v9 = vpop.xlane.xlu2 %919 }
 0x293   : > { %v930_v10 = vadd.f32 %v920_v9, %v914_v6 }
 0x294   : > { %937 = vst.msk [vmem:[#allocation3 + $0x10] sm:$0xff] %vm934_vm6, %v932_v8 }
 0x295   : > { %935 = vst.msk [vmem:[#allocation3] sm:$0xff] %vm934_vm6, %v930_v10 }
 0x29a   : > { %v929_v17 = vpop.xlane.xlu1 %928 }
 0x29b   : > { %v933_v11 = vadd.f32 %v929_v17, %v917_v16  ;;  %v923_v19 = vpop.xlane.xlu2 %922 }
 0x29c   : > { %v931_v0 = vadd.f32 %v923_v19, %v915_v18 }
 0x29d   : > { %938 = vst.msk [vmem:[#allocation3 + $0x18] sm:$0xff] %vm934_vm6, %v933_v11  ;;  %v964_v25 = vpop.f32.mrf.mxu0 }
 0x29e   : > { %936 = vst.msk [vmem:[#allocation3 + $0x8] sm:$0xff] %vm934_vm6, %v931_v0  ;;  %v1068_v27 = vadd.f32 %v1064_v24, %v964_v25 }
 0x2a0   : > { %1072 = vst.msk [vmem:[#allocation4] sm:$0xff] %vm751_vm5, %v1068_v27 }
 0x2a2   : > { %v1012_v29 = vpop.f32.mrf.mxu2 }
 0x2a3   : > { %v1070_v13 = vadd.f32 %v1066_v28, %v1012_v29 }
 0x2a5   : > { %1074 = vst.msk [vmem:[#allocation4 + $0x10] sm:$0xff] %vm751_vm5, %v1070_v13  ;;  %v966_v3 = vpop.f32.mrf.mxu0 }
 0x2a6   : > { %v988_v30 = vpop.f32.mrf.mxu1 }
 0x2a7   : > { %v1069_v31 = vadd.f32 %v1065_v21, %v988_v30 }
 0x2a9   : > { %1073 = vst.msk [vmem:[#allocation4 + $0x8] sm:$0xff] %vm751_vm5, %v1069_v31 }
 0x2aa   : > { %v1014_v32 = vpop.f32.mrf.mxu2 }
 0x2ab   : > { %v1036_v33 = vpop.f32.mrf.mxu3 }
 0x2ac   : > { %v1071_v34 = vadd.f32 %v1067_v23, %v1036_v33 }
 0x2ae   : > { %1075 = vst.msk [vmem:[#allocation4 + $0x18] sm:$0xff] %vm751_vm5, %v1071_v34  ;;  %v990_v35 = vpop.f32.mrf.mxu1 }
 0x2b3   : > { %v1038_v37 = vpop.f32.mrf.mxu3 }
 0x2b4 PF: > { %p1901_p3 = scmp.ne.s32.totalorder %s2273_s16, %s2270_s30 }
 0x2b5   : > { %s2123_s28 = smov (!%p1901_p3), 16   ;;  %s2124_s10 = smov (!%p1901_p3), 24  }
 0x2b6   : > { %1083 = sbr.rel (%p1901_p3) target bundleno = 1507 (0x5e3), region = 167  ;;  %s2125_s7 = smov (!%p1901_p3), 8  }
 0x2bb   : > { %v1084_v39 = vld [vmem:[%s2284_s21] sm:$0x3]  ;;  %v1085_v40 = vld [vmem:[%s2284_s21 + $0x2] sm:$0x3]  ;;  %v1086_v41 = vld [vmem:[%s2284_s21 + $0x4] sm:$0x3] }
 0x2bc   : > { %v1087_v43 = vld [vmem:[%s2284_s21 + $0x6] sm:$0x3]  ;;  %v1088_v44 = vld [vmem:[%s2284_s21 + $0x8] sm:$0x3]  ;;  %v1089_v45 = vld [vmem:[%s2284_s21 + $0xa] sm:$0x3] }
 0x2bd   : > { %v1090_v47 = vld [vmem:[%s2284_s21 + $0xc] sm:$0x3]  ;;  %v1091_v48 = vld [vmem:[%s2284_s21 + $0xe] sm:$0x3]  ;;  %v1092_v36 = vrot.slane %v1086_v41, 4  ;;  %vm1093_vm8 = vcmask 1047556  }
 0x2be   : > { %v1101_v49 = vrot.slane %v1087_v43, 4  ;;  %v1109_v51 = vrot.slane %v1090_v47, 4  ;;  %v1117_v52 = vrot.slane %v1091_v48, 4  ;;  %v2120_v53 = vmov 1934713408  }
 0x2bf   : > { %v1096_v54 = vunpack.c.l.s4 %v2120_v53  ;;  %v1094_v55 = vsel %vm1093_vm8, %v1092_v36, %v1084_v39  ;;  %vm1223_vm9 = vcmask 64512   ;;  %v1213_v18 = vld [vmem:[#allocation5] sm:$0xf]  ;;  %v1151_v25 = vld [vmem:[%s2286_s6 + $0x4] sm:$0x3]  ;;  %vm1417_vm11 = vcmask 7168  }
 0x2c0   : > { %v1102_v56 = vsel %vm1093_vm8, %v1101_v49, %v1085_v40  ;;  %v1110_v38 = vsel %vm1093_vm8, %v1109_v51, %v1088_v44  ;;  %v1118_v46 = vsel %vm1093_vm8, %v1117_v52, %v1089_v45  ;;  %v1152_v28 = vld [vmem:[%s2286_s6 + $0x6] sm:$0x3]  ;;  %v1155_v20 = vld [vmem:[%s2286_s6 + $0xc] sm:$0x3]  ;;  %v1156_v29 = vld [vmem:[%s2286_s6 + $0xe] sm:$0x3] }
 0x2c1   : > { %v2450_v50 = vunpack.c.0.s8 %v1096_v54  ;;  %v1157_v3 = vrot.slane %v1151_v25, 4  ;;  %v1165_v30 = vrot.slane %v1152_v28, 4  ;;  %v1149_v22 = vld [vmem:[%s2286_s6] sm:$0x3]  ;;  %v1150_v31 = vld [vmem:[%s2286_s6 + $0x2] sm:$0x3] }
 0x2c2   : > { %v1173_v23 = vrot.slane %v1155_v20, 4  ;;  %v1181_v32 = vrot.slane %v1156_v29, 4  ;;  %v1214_v33 = vld [vmem:[#allocation5 + $0x4] sm:$0xf]  ;;  %v1153_v35 = vld [vmem:[%s2286_s6 + $0x8] sm:$0x3] }
 0x2c3   : > { %v1098_v42 = vperm.slane %v1094_v55, %v2450_v50  ;;  %v1106_v57 = vperm.slane %v1102_v56, %v2450_v50  ;;  %v1114_v58 = vperm.slane %v1110_v38, %v2450_v50  ;;  %v1122_v59 = vperm.slane %v1118_v46, %v2450_v50  ;;  %v1154_v37 = vld [vmem:[%s2286_s6 + $0xa] sm:$0x3]  ;;  %v2522_v28 = vld [vmem:[#allocation2] sm:$0xff] }
 0x2c4   : > { %v1158_v40 = vsel %vm1093_vm8, %v1157_v3, %v1149_v22  ;;  %v1166_v41 = vsel %vm1093_vm8, %v1165_v30, %v1150_v31  ;;  %v1174_v44 = vsel %vm1093_vm8, %v1173_v23, %v1153_v35  ;;  %v1182_v45 = vsel %vm1093_vm8, %v1181_v32, %v1154_v37  ;;  %v1215_v52 = vld [vmem:[#allocation5 + $0x8] sm:$0xf]  ;;  %v2542_v31 = vld [vmem:[#allocation2 + $0x10] sm:$0xff] }
 0x2c5   : > { %v1127_v60 = vpack.i.b16 %v1106_v57, %v1098_v42  ;;  %v1139_v61 = vpack.i.b16 %v1122_v59, %v1114_v58  ;;  %v1128_v62 = vshrl.u32 %v1098_v42, 16  ;;  %v1129_v63 = vshrl.u32 %v1106_v57, 16 }
 0x2c6   : > { %v1140_v1 = vshrl.u32 %v1114_v58, 16  ;;  %v1141_v2 = vshrl.u32 %v1122_v59, 16  ;;  %v1099_v6 = vrot.slane %v1098_v42, 4  ;;  %v1107_v7 = vrot.slane %v1106_v57, 4 }
 0x2c7   : > { %1218 = vst [vmem:[#allocation1] ss:$4 sm:$0xff] %v1127_v60  ;;  %v1130_v4 = vpack.i.b16 %v1129_v63, %v1128_v62  ;;  %v1115_v9 = vrot.slane %v1114_v58, 4  ;;  %v1123_v10 = vrot.slane %v1122_v59, 4  ;;  %v2478_v48 = vperm.slane %v1158_v40, %v2450_v50  ;;  %v1216_v59 = vld [vmem:[#allocation5 + $0xc] sm:$0xf] }
 0x2c8   : > { %1221 = vst [vmem:[#allocation1 + $0x1] ss:$4 sm:$0xff] %v1139_v61  ;;  %v1142_v5 = vpack.i.b16 %v1141_v2, %v1140_v1  ;;  %v1100_v14 = vsel %vm1093_vm8, 0, %v1099_v6  ;;  %v1108_v15 = vsel %vm1093_vm8, 0, %v1107_v7  ;;  %v2481_v36 = vperm.slane %v1166_v41, %v2450_v50 }
 0x2c9   : > { %v1116_v16 = vsel %vm1093_vm8, 0, %v1115_v9  ;;  %v1124_v17 = vsel %vm1093_vm8, 0, %v1123_v10  ;;  %v1133_v11 = vpack.i.b16 %v1108_v15, %v1100_v14  ;;  %v1134_v0 = vshrl.u32 %v1100_v14, 16 }
 0x2ca   : > { %v1145_v19 = vpack.i.b16 %v1124_v17, %v1116_v16  ;;  %v1135_v27 = vshrl.u32 %v1108_v15, 16  ;;  %v1146_v13 = vshrl.u32 %v1116_v16, 16  ;;  %v1147_v21 = vshrl.u32 %v1124_v17, 16 }
 0x2cb   : > { %v2484_v49 = vperm.slane %v1174_v44, %v2450_v50  ;;  %v2487_v51 = vperm.slane %v1182_v45, %v2450_v50  ;;  %v1191_v53 = vpack.i.b16 %v2481_v36, %v2478_v48  ;;  %v1192_v38 = vshrl.u32 %v2478_v48, 16 }
 0x2cc   : > { %v1136_v34 = vpack.i.b16 %v1135_v27, %v1134_v0  ;;  %v1148_v39 = vpack.i.b16 %v1147_v21, %v1146_v13  ;;  %v1193_v46 = vshrl.u32 %v2481_v36, 16  ;;  %v1318_v62 = vlaneseq  ;;  %v2532_v21 = vld [vmem:[#allocation2 + $0x8] sm:$0xff] }
 0x2cd   : > { %v1203_v54 = vpack.i.b16 %v2487_v51, %v2484_v49  ;;  %v1204_v42 = vshrl.u32 %v2484_v49, 16  ;;  %v1205_v57 = vshrl.u32 %v2487_v51, 16  ;;  %v2121_v27 = vmov 0  }
 0x2ce   : > { %v1194_v58 = vpack.i.b16 %v1193_v46, %v1192_v38  ;;  %v1319_v63 = vshrl.u32 %v1318_v62, 7  ;;  %v1321_v1 = vand.u32 127, %v1318_v62  ;;  %2017 = vset.pattern.permute.xlu0 %v2121_v27  ;;  %2018 = vset.pattern.permute.xlu1 %v2121_v27  ;;  %v1163_v40 = vrot.slane %v2478_v48, 4 }
 0x2cf   : > { %v1222_v8 = vld.sshfl [vmem:[#allocation1] sm:$0xff pattern:$0x73625140]  ;;  %v1206_v60 = vpack.i.b16 %v1205_v57, %v1204_v42  ;;  %2016 = vset.pattern.permute.xlu2 %v2121_v27  ;;  %v1171_v41 = vrot.slane %v2481_v36, 4  ;;  %v1187_v44 = vrot.slane %v2487_v51, 4  ;;  %vm1435_vm12 = vcmask 1043456  }
 0x2d0   : > { %v1227_v12 = vsel %vm1223_vm9, %v1222_v8, 0  ;;  %1243 = vst [vmem:[#allocation1] ss:$4 sm:$0xff] %v1130_v4  ;;  %vm1322_vm10 = vcmp.le.s32.totalorder %v1321_v1, %v1319_v63  ;;  %v1164_v45 = vsel %vm1093_vm8, 0, %v1163_v40  ;;  %vm1723_vm13 = vcmask 130048  }
 0x2d1   : > { %1236 = vmatpush.bf16.xpose.msra.mxu0 %v1227_v12  ;;  %1246 = vst [vmem:[#allocation1 + $0x1] ss:$4 sm:$0xff] %v1142_v5  ;;  %v1198_v48 = vshrl.u32 %v1164_v45, 16  ;;  %vm1725_vm14 = vcmask 195584   ;;  %vm1728_vm15 = vcmask 257024  }
 0x2d8   : > { %1902 = vmatmul.msk.bf16.vlgmr.msra.gmra.mxu0 %vm1223_vm9, %v1213_v18  ;;  %v1247_v24 = vld.sshfl [vmem:[#allocation1] sm:$0xff pattern:$0x73625140] }
 0x2d9   : > { %v1251_v26 = vsel %vm1223_vm9, %v1247_v24, 0  ;;  %1267 = vst [vmem:[#allocation1] ss:$4 sm:$0xff] %v1133_v11 }
 0x2da   : > { %1260 = vmatpush.bf16.xpose.msra.mxu1 %v1251_v26  ;;  %1270 = vst [vmem:[#allocation1 + $0x1] ss:$4 sm:$0xff] %v1145_v19 }
 0x2e1   : > { %1903 = vmatmul.msk.bf16.vlgmr.msra.gmra.mxu1 %vm1223_vm9, %v1214_v33  ;;  %v1271_v43 = vld.sshfl [vmem:[#allocation1] sm:$0xff pattern:$0x73625140] }
 0x2e2   : > { %v1275_v47 = vsel %vm1223_vm9, %v1271_v43, 0  ;;  %1291 = vst [vmem:[#allocation1] ss:$4 sm:$0xff] %v1136_v34  ;;  %v2552_v34 = vld [vmem:[#allocation2 + $0x18] sm:$0xff]  ;;  %v1179_v43 = vrot.slane %v2484_v49, 4 }
 0x2e3   : > { %1284 = vmatpush.bf16.xpose.msra.mxu2 %v1275_v47  ;;  %1294 = vst [vmem:[#allocation1 + $0x1] ss:$4 sm:$0xff] %v1148_v39  ;;  %v1172_v47 = vsel %vm1093_vm8, 0, %v1171_v41 }
 0x2e4   : > { %v1199_v38 = vshrl.u32 %v1172_v47, 16 }
 0x2e6   : > { %v1200_v49 = vpack.i.b16 %v1199_v38, %v1198_v48  ;;  %v1525_v48 = vld [vmem:[#allocation4 + $0x10] sm:$0xff] }
 0x2ea   : > { %1904 = vmatmul.msk.bf16.vlgmr.msra.gmra.mxu2 %vm1223_vm9, %v1215_v52  ;;  %v1295_v55 = vld.sshfl [vmem:[#allocation1] sm:$0xff pattern:$0x73625140]  ;;  %v1180_v52 = vsel %vm1093_vm8, 0, %v1179_v43 }
 0x2eb   : > { %v1299_v56 = vsel %vm1223_vm9, %v1295_v55, 0  ;;  %1427 = vst [vmem:[#allocation1] ss:$4 sm:$0xff] %v1191_v53  ;;  %v1188_v53 = vsel %vm1093_vm8, 0, %v1187_v44  ;;  %v1210_v36 = vshrl.u32 %v1180_v52, 16 }
 0x2ec   : > { %1308 = vmatpush.bf16.xpose.msra.mxu3 %v1299_v56  ;;  %1430 = vst [vmem:[#allocation1 + $0x1] ss:$4 sm:$0xff] %v1203_v54  ;;  %v1197_v54 = vpack.i.b16 %v1172_v47, %v1164_v45  ;;  %v1209_v55 = vpack.i.b16 %v1188_v53, %v1180_v52  ;;  %v1211_v46 = vshrl.u32 %v1188_v53, 16 }
 0x2ee   : > { %v1212_v42 = vpack.i.b16 %v1211_v46, %v1210_v36 }
 0x2f3   : > { %v2499_v61 = vld.sshfl [vmem:[#allocation1] sm:$0xff pattern:$0x73625140]  ;;  %1905 = vmatmul.msk.bf16.vlgmr.msra.gmra.mxu3 %vm1223_vm9, %v1216_v59 }
 0x2f4   : > { %1452 = vst [vmem:[#allocation1] ss:$4 sm:$0xff] %v1194_v58  ;;  %v1436_v58 = vsel %vm1435_vm12, %v2499_v61, 0 }
 0x2f5   : > { %1455 = vst [vmem:[#allocation1 + $0x1] ss:$4 sm:$0xff] %v1206_v60  ;;  %1445 = vmatpush.bf16.msrb.mxu0 %v1436_v58 }
 0x2fc   : > { %v1456_v56 = vld.sshfl [vmem:[#allocation1] sm:$0xff pattern:$0x73625140] }
 0x2fd   : > { %1476 = vst [vmem:[#allocation1] ss:$4 sm:$0xff] %v1197_v54  ;;  %v1460_v59 = vsel %vm1435_vm12, %v1456_v56, 0 }
 0x2fe   : > { %1479 = vst [vmem:[#allocation1 + $0x1] ss:$4 sm:$0xff] %v1209_v55  ;;  %1469 = vmatpush.bf16.msrb.mxu1 %v1460_v59 }
 0x305   : > { %v1480_v51 = vld.sshfl [vmem:[#allocation1] sm:$0xff pattern:$0x73625140] }
 0x306   : > { %v1484_v57 = vsel %vm1435_vm12, %v1480_v51, 0  ;;  %1500 = vst [vmem:[#allocation1] ss:$4 sm:$0xff] %v1200_v49 }
 0x307   : > { %1493 = vmatpush.bf16.msrb.mxu2 %v1484_v57  ;;  %1503 = vst [vmem:[#allocation1 + $0x1] ss:$4 sm:$0xff] %v1212_v42 }
 0x30e   : > { %v1504_v60 = vld.sshfl [vmem:[#allocation1] sm:$0xff pattern:$0x73625140] }
 0x30f   : > { %v1508_v62 = vsel %vm1435_vm12, %v1504_v60, 0 }
 0x310   : > { %1517 = vmatpush.bf16.msrb.mxu3 %v1508_v62  ;;  %v1523_v62 = vld [vmem:[#allocation4] sm:$0xff] }
 0x355   : > { %v1238_v2 = vpop.f32.mrf.mxu0 }
 0x356   : > { %v1314_v4 = vmul.f32 0.35355338, %v1238_v2 }
 0x358   : > { %v2503_v5 = vsel %vm1322_vm10, %v1314_v4, -1e+30 }
 0x359   : > { %v1333_v6 = vsel %vm1223_vm9, %v2503_v5, -inf }
 0x35a   : > { %1334 = vmax.xlane.f32.xlu1 %v1333_v6 }
 0x35d   : > { %v1240_v7 = vpop.f32.mrf.mxu0 }
 0x35e   : > { %v1262_v8 = vpop.f32.mrf.mxu1 }
 0x35f   : > { %v1315_v9 = vmul.f32 0.35355338, %v1262_v8 }
 0x361   : > { %v2508_v10 = vsel %vm1322_vm10, %v1315_v9, -1e+30 }
 0x362   : > { %v1336_v12 = vsel %vm1223_vm9, %v2508_v10, -inf }
 0x363   : > { %1337 = vmax.xlane.f32.xlu1 %v1336_v12 }
 0x366   : > { %v1264_v14 = vpop.f32.mrf.mxu1 }
 0x36d   : > { %v1286_v15 = vpop.f32.mrf.mxu2 }
 0x36e   : > { %v1316_v16 = vmul.f32 0.35355338, %v1286_v15 }
 0x370   : > { %v2513_v17 = vsel %vm1322_vm10, %v1316_v16, -1e+30 }
 0x371   : > { %v1339_v18 = vsel %vm1223_vm9, %v2513_v17, -inf }
 0x372   : > { %1340 = vmax.xlane.f32.xlu0 %v1339_v18 }
 0x375   : > { %v1288_v11 = vpop.f32.mrf.mxu2 }
 0x376   : > { %v1310_v19 = vpop.f32.mrf.mxu3 }
 0x377   : > { %v1317_v24 = vmul.f32 0.35355338, %v1310_v19 }
 0x379   : > { %v2518_v0 = vsel %vm1322_vm10, %v1317_v24, -1e+30 }
 0x37a   : > { %v1342_v25 = vsel %vm1223_vm9, %v2518_v0, -inf }
 0x37b   : > { %1343 = vmax.xlane.f32.xlu0 %v1342_v25 }
 0x37e   : > { %v1312_v26 = vpop.f32.mrf.mxu3 }
 0x3cd   : > { %v1335_v20 = vpop.xlane.xlu1 %1334 }
 0x3ce   : > { %v2525_v29 = vmax.f32 %v2522_v28, %v1335_v20 }
 0x3d0   : > { %v1349_v13 = vsub.f32 %v2522_v28, %v2525_v29  ;;  %1559 = vst.msk [vmem:[#allocation2] sm:$0xff] %vm1417_vm11, %v2525_v29  ;;  %1363 = vperm.xlu0 %2017, %v2525_v29  }
 0x3d2   : > { %v1353_v20 = vmul.f32 1.442695, %v1349_v13 }
 0x3d6   : > { %v1338_v3 = vpop.xlane.xlu1 %1337 }
 0x3d7   : > { %v2535_v30 = vmax.f32 %v2532_v21, %v1338_v3 }
 0x3d9   : > { %v1350_v22 = vsub.f32 %v2532_v21, %v2535_v30  ;;  %1560 = vst.msk [vmem:[#allocation2 + $0x8] sm:$0xff] %vm1417_vm11, %v2535_v30  ;;  %1368 = vperm.xlu1 %2018, %v2535_v30   ;;  %v1394_v21 = vld [vmem:[#allocation3 + $0x8] sm:$0xff] }
 0x3db   : > { %v1355_v28 = vmul.f32 1.442695, %v1350_v22 }
 0x3e5   : > { %v1341_v23 = vpop.xlane.xlu0 %1340 }
 0x3e6   : > { %v2545_v32 = vmax.f32 %v2542_v31, %v1341_v23 }
 0x3e8   : > { %v1351_v33 = vsub.f32 %v2542_v31, %v2545_v32  ;;  %1561 = vst.msk [vmem:[#allocation2 + $0x10] sm:$0xff] %vm1417_vm11, %v2545_v32  ;;  %1373 = vperm.xlu2 %2016, %v2545_v32   ;;  %v1395_v31 = vld [vmem:[#allocation3 + $0x10] sm:$0xff]  ;;  %v1393_v32 = vld [vmem:[#allocation3] sm:$0xff] }
 0x3ea   : > { %v1357_v3 = vmul.f32 1.442695, %v1351_v33 }
 0x3ee   : > { %v1344_v35 = vpop.xlane.xlu0 %1343 }
 0x3ef   : > { %v2555_v37 = vmax.f32 %v2552_v34, %v1344_v35 }
 0x3f1   : > { %v1352_v39 = vsub.f32 %v2552_v34, %v2555_v37  ;;  %1562 = vst.msk [vmem:[#allocation2 + $0x18] sm:$0xff] %vm1417_vm11, %v2555_v37  ;;  %1378 = vperm.xlu2 %2016, %v2555_v37  }
 0x3f3   : > { %v1359_v35 = vmul.f32 1.442695, %v1352_v39  ;;  %v1396_v39 = vld [vmem:[#allocation3 + $0x18] sm:$0xff] }
 0x442   : > { %v1374_v63 = vpop.permute.xlu2 %1373  ;;  %v1364_v1 = vpop.permute.xlu0 %1363 }
 0x443   : > { %v1383_v2 = vsub.f32 %v2513_v17, %v1374_v63  ;;  %v1381_v4 = vsub.f32 %v2503_v5, %v1364_v1  ;;  %v1526_v63 = vld [vmem:[#allocation4 + $0x18] sm:$0xff] }
 0x445   : > { %v1389_v6 = vmul.f32 1.442695, %v1383_v2  ;;  %v1385_v7 = vmul.f32 1.442695, %v1381_v4 }
 0x447   : > { %2019 = vpow2.f32 %v1389_v6 }
 0x448   : > { %2021 = vpow2.f32 %v1385_v7 }
 0x44b   : > { %v1379_v8 = vpop.permute.xlu2 %1378  ;;  %v1369_v9 = vpop.permute.xlu1 %1368 }
 0x44c   : > { %v1384_v61 = vsub.f32 %v2518_v0, %v1379_v8  ;;  %v1382_v12 = vsub.f32 %v2508_v10, %v1369_v9 }
 0x44d   : > { %v2020_v14 = vpop.eup %2019 }
 0x44e   : > { %v2022_v15 = vpop.eup %2021  ;;  %v1391_v16 = vmul.f32 1.442695, %v1384_v61  ;;  %v1387_v18 = vmul.f32 1.442695, %v1382_v12  ;;  %v1407_v11 = vsel %vm1223_vm9, %v2020_v14, 0.0  ;;  %v1424_v19 = vpack.c.bf16 %v2020_v14, %v2020_v14 }
 0x44f   : > { %1408 = vadd.xlane.f32.xlu2 %v1407_v11  ;;  %v1401_v5 = vsel %vm1223_vm9, %v2022_v15, 0.0  ;;  %v1422_v17 = vpack.c.bf16 %v2022_v15, %v2022_v15 }
 0x450   : > { %2023 = vpow2.f32 %v1391_v16  ;;  %1908 = vmatmul.msk.bf16.vlgmr.msrb.gmra.mxu2 %vm1223_vm9, %v1424_v19  ;;  %1402 = vadd.xlane.f32.xlu1 %v1401_v5  ;;  %v1524_v16 = vld [vmem:[#allocation4 + $0x8] sm:$0xff] }
 0x451   : > { %2025 = vpow2.f32 %v1387_v18  ;;  %1906 = vmatmul.msk.bf16.vlgmr.msrb.gmra.mxu0 %vm1223_vm9, %v1422_v17 }
 0x452   : > { %2027 = vpow2.f32 %v1353_v20 }
 0x453   : > { %2029 = vpow2.f32 %v1357_v3 }
 0x454   : > { %2031 = vpow2.f32 %v1359_v35 }
 0x455   : > { %2033 = vpow2.f32 %v1355_v28 }
 0x456   : > { %v2024_v24 = vpop.eup %2023 }
 0x457   : > { %v2026_v10 = vpop.eup %2025  ;;  %v1410_v0 = vsel %vm1223_vm9, %v2024_v24, 0.0  ;;  %v1425_v25 = vpack.c.bf16 %v2024_v24, %v2024_v24 }
 0x458   : > { %1411 = vadd.xlane.f32.xlu0 %v1410_v0  ;;  %v1404_v26 = vsel %vm1223_vm9, %v2026_v10, 0.0  ;;  %v1423_v27 = vpack.c.bf16 %v2026_v10, %v2026_v10  ;;  %v2028_v23 = vpop.eup %2027 }
 0x459   : > { %1909 = vmatmul.msk.bf16.vlgmr.msrb.gmra.mxu3 %vm1223_vm9, %v1425_v25  ;;  %1405 = vadd.xlane.f32.xlu2 %v1404_v26  ;;  %v2030_v40 = vpop.eup %2029  ;;  %v1397_v43 = vmul.f32 %v2028_v23, %v1393_v32  ;;  %v2122_v26 = vmov 1983009808  }
 0x45a   : > { %1907 = vmatmul.msk.bf16.vlgmr.msrb.gmra.mxu1 %vm1223_vm9, %v1423_v27  ;;  %v2032_v29 = vpop.eup %2031  ;;  %v1399_v33 = vmul.f32 %v2030_v40, %v1395_v31  ;;  %v1605_v27 = vunpack.c.l.s4 %v2122_v26 }
 0x45b   : > { %v2034_v13 = vpop.eup %2033  ;;  %v1400_v30 = vmul.f32 %v2032_v29, %v1396_v39 }
 0x45c   : > { %v1398_v45 = vmul.f32 %v2034_v13, %v1394_v21  ;;  %v1606_v28 = vunpack.c.0.s8 %v1605_v27 }
 0x469   : > { %1529 = vperm.xlu1 %2018, %v2028_v23  }
 0x471   : > { %1539 = vperm.xlu2 %2016, %v2030_v40  }
 0x479   : > { %1544 = vperm.xlu2 %2016, %v2032_v29  }
 0x481   : > { %1534 = vperm.xlu2 %2016, %v2034_v13  }
 0x4c2   : > { %v1409_v41 = vpop.xlane.xlu2 %1408 }
 0x4c3   : > { %v1415_v44 = vadd.f32 %v1409_v41, %v1399_v33  ;;  %v1403_v34 = vpop.xlane.xlu1 %1402 }
 0x4c4   : > { %v1413_v37 = vadd.f32 %v1403_v34, %v1397_v43 }
 0x4c5   : > { %1420 = vst.msk [vmem:[#allocation3 + $0x10] sm:$0xff] %vm1417_vm11, %v1415_v44 }
 0x4c6   : > { %1418 = vst.msk [vmem:[#allocation3] sm:$0xff] %vm1417_vm11, %v1413_v37 }
 0x4cb   : > { %v1412_v22 = vpop.xlane.xlu0 %1411 }
 0x4cc   : > { %v1416_v47 = vadd.f32 %v1412_v22, %v1400_v30  ;;  %v1406_v52 = vpop.xlane.xlu2 %1405  ;;  %v1565_v53 = vld [vmem:[#allocation3 + $0x10] sm:$0xff] }
 0x4cd   : > { %v1414_v54 = vadd.f32 %v1406_v52, %v1398_v45  ;;  %2035 = vrcp.f32 %v1565_v53  ;;  %v1563_v55 = vld [vmem:[#allocation3] sm:$0xff] }
 0x4ce   : > { %1421 = vst.msk [vmem:[#allocation3 + $0x18] sm:$0xff] %vm1417_vm11, %v1416_v47  ;;  %v1447_v56 = vpop.f32.mrf.mxu0  ;;  %2037 = vrcp.f32 %v1563_v55 }
 0x4cf   : > { %1419 = vst.msk [vmem:[#allocation3 + $0x8] sm:$0xff] %vm1417_vm11, %v1414_v54 }
 0x4d3   : > { %v2036_v38 = vpop.eup %2035  ;;  %v1495_v36 = vpop.f32.mrf.mxu2 }
 0x4d4   : > { %v2038_v46 = vpop.eup %2037  ;;  %1587 = vperm.xlu0 %2017, %v2036_v38   ;;  %v1540_v49 = vpop.permute.xlu2 %1539 }
 0x4d5   : > { %v1549_v42 = vmul.f32 %v1540_v49, %v1525_v48  ;;  %1577 = vperm.xlu2 %2016, %v2038_v46   ;;  %v1566_v51 = vld [vmem:[#allocation3 + $0x18] sm:$0xff] }
 0x4d6   : > { %v1449_v57 = vpop.f32.mrf.mxu0  ;;  %2039 = vrcp.f32 %v1566_v51  ;;  %v1564_v58 = vld [vmem:[#allocation3 + $0x8] sm:$0xff] }
 0x4d7   : > { %v1553_v59 = vadd.f32 %v1549_v42, %v1495_v36  ;;  %v1471_v60 = vpop.f32.mrf.mxu1  ;;  %2041 = vrcp.f32 %v1564_v58 }
 0x4d9   : > { %1557 = vst.msk [vmem:[#allocation4 + $0x10] sm:$0xff] %vm1223_vm9, %v1553_v59 }
 0x4db   : > { %v1497_v1 = vpop.f32.mrf.mxu2  ;;  %v1530_v2 = vpop.permute.xlu1 %1529 }
 0x4dc   : > { %v2040_v4 = vpop.eup %2039  ;;  %v1519_v6 = vpop.f32.mrf.mxu3  ;;  %v1547_v8 = vmul.f32 %v1530_v2, %v1523_v62 }
 0x4dd   : > { %v1545_v7 = vpop.permute.xlu2 %1544  ;;  %v2042_v9 = vpop.eup %2041  ;;  %1592 = vperm.xlu1 %2018, %v2040_v4  }
 0x4de   : > { %v1550_v61 = vmul.f32 %v1545_v7, %v1526_v63  ;;  %v1551_v12 = vadd.f32 %v1547_v8, %v1447_v56  ;;  %1582 = vperm.xlu2 %2016, %v2042_v9  }
 0x4df   : > { %v1473_v15 = vpop.f32.mrf.mxu1 }
 0x4e0   : > { %v1554_v14 = vadd.f32 %v1550_v61, %v1519_v6  ;;  %1555 = vst.msk [vmem:[#allocation4] sm:$0xff] %vm1223_vm9, %v1551_v12  ;;  %v1573_v25 = vld [vmem:[#allocation4 + $0x10] sm:$0xff] }
 0x4e2   : > { %1558 = vst.msk [vmem:[#allocation4 + $0x18] sm:$0xff] %vm1223_vm9, %v1554_v14 }
 0x4e4   : > { %v1521_v18 = vpop.f32.mrf.mxu3 }
 0x4e5   : > { %v1535_v11 = vpop.permute.xlu2 %1534 }
 0x4e6   : > { %v1548_v19 = vmul.f32 %v1535_v11, %v1524_v16 }
 0x4e7   : > { %v1571_v24 = vld [vmem:[#allocation4] sm:$0xff] }
 0x4e8   : > { %v1552_v5 = vadd.f32 %v1548_v19, %v1471_v60 }
 0x4e9   : > { %v1574_v33 = vld [vmem:[#allocation4 + $0x18] sm:$0xff] }
 0x4ea   : > { %1556 = vst.msk [vmem:[#allocation4 + $0x8] sm:$0xff] %vm1223_vm9, %v1552_v5 }
 0x4f1   : > { %v1572_v40 = vld [vmem:[#allocation4 + $0x8] sm:$0xff] }
 0x52f   : > { %v1578_v17 = vpop.permute.xlu2 %1577 }
 0x530   : > { %v1595_v10 = vmul.f32 %v1578_v17, %v1571_v24 }
 0x532   : > { %v1602_v23 = vrot.slane %v1595_v10, 4 }
 0x538   : > { %v1583_v3 = vpop.permute.xlu2 %1582 }
 0x539   : > { %v1596_v29 = vmul.f32 %v1583_v3, %v1572_v40 }
 0x53b   : > { %v1614_v43 = vrot.slane %v1596_v29, 4 }
 0x546   : > { %v1588_v0 = vpop.permute.xlu0 %1587 }
 0x547   : > { %v1597_v20 = vmul.f32 %v1588_v0, %v1573_v25 }
 0x549   : > { %v1599_v35 = vrot.slane %v1597_v20, 4  ;;  %v1603_v13 = vsel %vm1093_vm8, %v1597_v20, %v1602_v23 }
 0x54a   : > { %v1611_v32 = vperm.slane %v1603_v13, %v1606_v28 }
 0x54b   : > { %v1601_v31 = vsel %vm1093_vm8, %v1599_v35, %v1595_v10 }
 0x54c   : > { %v1607_v34 = vperm.slane %v1601_v31, %v1606_v28  ;;  %v1638_v21 = vrot.slane %v1611_v32, 4 }
 0x54e   : > { %v1626_v45 = vrot.slane %v1607_v34, 4 }
 0x54f   : > { %v1593_v41 = vpop.permute.xlu1 %1592 }
 0x550   : > { %v1598_v44 = vmul.f32 %v1593_v41, %v1574_v33 }
 0x552   : > { %v1612_v37 = vrot.slane %v1598_v44, 4  ;;  %v1615_v39 = vsel %vm1093_vm8, %v1598_v44, %v1614_v43 }
 0x553   : > { %v1623_v30 = vperm.slane %v1615_v39, %v1606_v28 }
 0x554   : > { %v1613_v22 = vsel %vm1093_vm8, %v1612_v37, %v1596_v29 }
 0x555   : > { %v1619_v47 = vperm.slane %v1613_v22, %v1606_v28  ;;  %v1636_v52 = vrot.slane %v1623_v30, 4  ;;  %v1639_v53 = vsel %vm1093_vm8, %v1623_v30, %v1638_v21 }
 0x556   : > { %v1647_v54 = vperm.slane %v1639_v53, %v2450_v50 }
 0x557   : > { %v1624_v55 = vrot.slane %v1619_v47, 4  ;;  %v1627_v56 = vsel %vm1093_vm8, %v1619_v47, %v1626_v45  ;;  %v1637_v48 = vsel %vm1093_vm8, %v1636_v52, %v1611_v32 }
 0x558   : > { %v1635_v38 = vperm.slane %v1627_v56, %v2450_v50  ;;  %v1643_v36 = vperm.slane %v1637_v48, %v2450_v50  ;;  %v1654_v46 = vrot.slane %v1647_v54, 4 }
 0x559   : > { %v1625_v49 = vsel %vm1093_vm8, %v1624_v55, %v1607_v34 }
 0x55a   : > { %v1631_v42 = vperm.slane %v1625_v49, %v2450_v50  ;;  %v1650_v51 = vrot.slane %v1635_v38, 4  ;;  %v1652_v57 = vrot.slane %v1643_v36, 4  ;;  %v1655_v58 = vsel %vm1093_vm8, 0.0, %v1654_v46 }
 0x55b   : > { %v1667_v59 = vsel %vm1093_vm8, %v1654_v46, %v1643_v36  ;;  %v1672_v60 = vrot.slane %v1655_v58, 4 }
 0x55c   : > { %v1651_v62 = vsel %vm1093_vm8, 0.0, %v1650_v51  ;;  %v1648_v63 = vrot.slane %v1631_v42, 4  ;;  %v1653_v1 = vsel %vm1093_vm8, 0.0, %v1652_v57  ;;  %v1656_v2 = vsel %vm1093_vm8, %v1650_v51, %v1631_v42 }
 0x55d   : > { %v1661_v4 = vrot.slane %v1651_v62, 4  ;;  %v1660_v6 = vperm.slane %v1656_v2, %v1606_v28  ;;  %v1671_v7 = vperm.slane %v1667_v59, %v1606_v28  ;;  %v1673_v8 = vsel %vm1093_vm8, %v1672_v60, %v1653_v1 }
 0x55e   : > { %v1649_v9 = vsel %vm1093_vm8, 0.0, %v1648_v63  ;;  %v1677_v61 = vperm.slane %v1673_v8, %v1606_v28 }
 0x55f   : > { %v1662_v12 = vsel %vm1093_vm8, %v1661_v4, %v1649_v9  ;;  %v1680_v14 = vrot.slane %v1660_v6, 4  ;;  %v1692_v15 = vrot.slane %v1671_v7, 4 }
 0x560   : > { %v1666_v16 = vperm.slane %v1662_v12, %v1606_v28  ;;  %v1690_v18 = vrot.slane %v1677_v61, 4 }
 0x561   : > { %v1693_v11 = vsel %vm1093_vm8, %v1677_v61, %v1692_v15 }
 0x562   : > { %v1681_v19 = vsel %vm1093_vm8, %v1666_v16, %v1680_v14  ;;  %v1701_v5 = vperm.slane %v1693_v11, %v2450_v50  ;;  %v1678_v17 = vrot.slane %v1666_v16, 4  ;;  %v1691_v24 = vsel %vm1093_vm8, %v1690_v18, %v1671_v7 }
 0x563   : > { %v1689_v10 = vperm.slane %v1681_v19, %v2450_v50  ;;  %v1697_v0 = vperm.slane %v1691_v24, %v2450_v50 }
 0x564   : > { %v1706_v25 = vrot.slane %v1701_v5, 4  ;;  %v1679_v26 = vsel %vm1093_vm8, %v1678_v17, %v1660_v6 }
 0x565   : > { %v1708_v27 = vrot.slane %v1689_v10, 4  ;;  %v1685_v20 = vperm.slane %v1679_v26, %v2450_v50  ;;  %v1702_v3 = vrot.slane %v1697_v0, 4 }
 0x566   : > { %v1707_v23 = vsel %vm1093_vm8, %v1706_v25, %v1689_v10 }
 0x567   : > { %1715 = vrot.lane.b32.xlu0 %v1707_v23, %s2123_s28  ;;  %v1709_v35 = vsel %vm1093_vm8, %v1701_v5, %v1708_v27  ;;  %v1704_v40 = vrot.slane %v1685_v20, 4  ;;  %v1703_v28 = vsel %vm1093_vm8, %v1702_v3, %v1685_v20 }
 0x568   : > { %1719 = vrot.lane.b32.xlu2 %v1709_v35, %s2124_s10 }
 0x569   : > { %v1705_v29 = vsel %vm1093_vm8, %v1697_v0, %v1704_v40 }
 0x56a   : > { %1711 = vrot.lane.b32.xlu1 %v1705_v29, %s2125_s7 }
 0x5c2   : > { %v1720_v32 = vpop.permute.xlu2 %1719 }
 0x5d9   : > { %v1716_v13 = vpop.permute.xlu0 %1715 }
 0x5dc   : > { %v1712_v50 = vpop.permute.xlu1 %1711 }
 0x5dd   : > { %v1722_v31 = vsel %vm1223_vm9, %v1703_v28, %v1712_v50 }
 0x5de   : > { %v1724_v33 = vsel %vm1723_vm13, %v1722_v31, %v1716_v13 }
 0x5df   : > { %v1726_v41 = vsel %vm1725_vm14, %v1724_v33, %v1720_v32 }
 0x5e0   : > { %v1727_v43 = vpack.c.bf16 %v1726_v41, %v1726_v41 }
 0x5e2   : > { %1729 = vst.msk [vmem:[%s484_s20] sm:$0xf] %vm1728_vm15, %v1727_v43 }
 0x5e3 PF: > { %s17_s0 = sadd.s32 1, %s2113_s0   ;;  %s2677_s22 = smov %s2085_s23 }
 0x5e4   : > { %p14_p4 = scmp.ge.s32.totalorder %s17_s0, 4   ;;  %s2678_s23 = smov %s2241_s14 }
 0x5e5   : > { %s2679_s24 = smov %s2093_s25  ;;  %s2680_s25 = smov %s2238_s13 }
 0x5e6   : > { %s2681_s26 = smov %s2101_s27  ;;  %s2682_s27 = smov %s2229_s9 }
 0x5e7   : > { %s2683_s28 = smov %s2109_s29  ;;  %s2684_s29 = smov %s2686_s1 }
 0x5e8   :  { %16 = sbr.rel (!%p14_p4) target bundleno = 8 (0x8), region = 241 }

</bundles_post_ra>
